<compile_context>
chip_gen: v7x
topology: tpu7x:2x2x1
jax: 0.10.0
libtpu: 0.0.40
codegen_flags: <defaults>
</compile_context>

<pallas_src>
import functools

import jax
import jax.numpy as jnp
from jax.experimental import pallas as pl
from jax.experimental.pallas import tpu as pltpu


# --------------------------------------------------------------------------- #
# Kernel
# --------------------------------------------------------------------------- #
def ddqn_kernel(x_ref,
                w1_ref, b1_ref,
                w2_ref, b2_ref,
                w3_ref, b3_ref,
                w4_ref, b4_ref,
                w5_ref, b5_ref,
                o_ref):
    """Fused 5-layer MLP: 4x (matmul + bias + relu) then matmul + bias + tanh.

    x and weights arrive in the compute dtype (f32 or bf16); MXU accumulation
    is f32. Biases are f32 and added post-matmul. The output is a lane-dense
    (tile, act_pad) slab (act_pad is a multiple of 128, zero-padded lanes).
    """
    cdt = w1_ref.dtype  # compute dtype for MXU operands (f32 or bf16)

    h = jnp.dot(x_ref[...], w1_ref[...],
                preferred_element_type=jnp.float32) + b1_ref[...]
    h = jnp.maximum(h, 0.0)

    h = jnp.dot(h.astype(cdt), w2_ref[...],
                preferred_element_type=jnp.float32) + b2_ref[...]
    h = jnp.maximum(h, 0.0)

    h = jnp.dot(h.astype(cdt), w3_ref[...],
                preferred_element_type=jnp.float32) + b3_ref[...]
    h = jnp.maximum(h, 0.0)

    h = jnp.dot(h.astype(cdt), w4_ref[...],
                preferred_element_type=jnp.float32) + b4_ref[...]
    h = jnp.maximum(h, 0.0)

    y = jnp.dot(h.astype(cdt), w5_ref[...],
                preferred_element_type=jnp.float32) + b5_ref[...]
    o_ref[...] = jnp.tanh(y).astype(o_ref.dtype)


# --------------------------------------------------------------------------- #
# Helpers
# --------------------------------------------------------------------------- #
def _round_up(n, m):
    return ((n + m - 1) // m) * m


def _pick_block_batch(batch, requested):
    """Rows per grid step.

    * never larger than the (8-rounded) batch -> no wasted rows / wasted MXU
      passes for small latency-sensitive batches;
    * when the batch holds >= two full 128-row tiles, cap the tile at half the
      batch so the parallel grid axis has >= 2 steps (v7x has 2 TensorCores).
    """
    requested = _round_up(max(int(requested), 8), 8)
    b8 = _round_up(batch, 8)
    bb = min(requested, b8)
    if b8 >= 256:
        bb = min(bb, _round_up((b8 + 1) // 2, 8))
    return max(bb, 8)


def _vmem_limit_bytes(block_batch, in_dim, dens_pad, act_pad,
                      compute_bytes, out_bytes):
    """Scoped-VMEM budget with headroom; valid range on all of v5e/v6e/v7x."""
    weights = (in_dim * dens_pad + 3 * dens_pad * dens_pad
               + dens_pad * act_pad) * compute_bytes          # single-buffered
    biases = (4 * dens_pad + act_pad) * 4                      # f32
    x_tile = 2 * block_batch * in_dim * compute_bytes          # double-buffered
    out_tile = 2 * block_batch * act_pad * out_bytes           # double-buffered
    hidden = 4 * block_batch * dens_pad * 4                    # f32 intermediates
    budget = weights + biases + x_tile + out_tile + hidden
    budget = int(budget * 1.5) + (2 << 20)                     # compiler slack
    return min(max(budget, 16 << 20), 64 << 20)


# --------------------------------------------------------------------------- #
# Wrapper
# --------------------------------------------------------------------------- #
@functools.partial(jax.jit, static_argnames=("block_batch", "compute_dtype"))
def ddqn_forward(x, params, *, block_batch=256, compute_dtype=jnp.bfloat16):
    """Fused DDQN forward pass.

    x:       (B, input_dim) float32
    params:  dict with w1..w5 transposed to (in, out), b1..b5 as (1, out), f32.
    Returns: (B, action_dim) float32 Q-values in [-1, 1].
    """
    w1, b1 = params["w1"], params["b1"]
    w2, b2 = params["w2"], params["b2"]
    w3, b3 = params["w3"], params["b3"]
    w4, b4 = params["w4"], params["b4"]
    w5, b5 = params["w5"], params["b5"]

    B, in_dim = x.shape
    density = w1.shape[1]
    act_dim = w5.shape[1]

    dens_pad = _round_up(max(density, 128), 128)
    act_pad = _round_up(max(act_dim, 128), 128)

    # Zero-pad hidden width to a lane-dense multiple of 128 (exact transform).
    if dens_pad != density:
        dcol = ((0, 0), (0, dens_pad - density))
        dboth = ((0, dens_pad - density), (0, dens_pad - density))
        w1 = jnp.pad(w1, dcol)
        b1 = jnp.pad(b1, dcol)
        w2 = jnp.pad(w2, dboth)
        b2 = jnp.pad(b2, dcol)
        w3 = jnp.pad(w3, dboth)
        b3 = jnp.pad(b3, dcol)
        w4 = jnp.pad(w4, dboth)
        b4 = jnp.pad(b4, dcol)
        w5 = jnp.pad(w5, ((0, dens_pad - density), (0, 0)))
    # Lane-pad the final layer so the output store is an unmasked vst.
    if act_pad != act_dim:
        w5 = jnp.pad(w5, ((0, 0), (0, act_pad - act_dim)))
        b5 = jnp.pad(b5, ((0, 0), (0, act_pad - act_dim)))

    # Tile the batch; pad rows to a tile multiple and slice back afterwards.
    bb = _pick_block_batch(B, block_batch)
    b_pad = _round_up(B, bb)
    if b_pad != B:
        x = jnp.pad(x, ((0, b_pad - B), (0, 0)))

    # MXU operands in compute dtype (x cast here, not per grid step in-kernel);
    # biases stay f32 for the post-accumulation add.
    x = x.astype(compute_dtype)
    ws = [w.astype(compute_dtype) for w in (w1, w2, w3, w4, w5)]
    bs = [b.astype(jnp.float32) for b in (b1, b2, b3, b4, b5)]

    # bf16 output slab when computing in bf16 (halves the dominant writeback);
    # f32 slab in the f32 checking path.
    if jnp.dtype(compute_dtype) == jnp.dtype(jnp.float32):
        store_dtype = jnp.float32
    else:
        store_dtype = jnp.bfloat16

    def resident_spec(arr):
        # Grid-invariant operand: single pipeline buffer (no dead double buffer).
        return pl.BlockSpec(arr.shape, lambda i: (0, 0),
                            pipeline_mode=pl.Buffered(1))

    in_specs = [pl.BlockSpec((bb, in_dim), lambda i: (i, 0))]
    for w, b in zip(ws, bs):
        in_specs.append(resident_spec(w))
        in_specs.append(resident_spec(b))

    vmem_limit = _vmem_limit_bytes(
        bb, in_dim, dens_pad, act_pad,
        jnp.dtype(compute_dtype).itemsize, jnp.dtype(store_dtype).itemsize)

    out = pl.pallas_call(
        ddqn_kernel,
        out_shape=jax.ShapeDtypeStruct((b_pad, act_pad), store_dtype),
        grid_spec=pl.GridSpec(
            grid=(b_pad // bb,),
            in_specs=in_specs,
            out_specs=pl.BlockSpec((bb, act_pad), lambda i: (i, 0)),
        ),
        compiler_params=pltpu.CompilerParams(
            dimension_semantics=("parallel",),
            vmem_limit_bytes=vmem_limit),
    )(x, ws[0], bs[0], ws[1], bs[1], ws[2], bs[2], ws[3], bs[3], ws[4], bs[4])

    return out[:B, :act_dim].astype(jnp.float32)


# --------------------------------------------------------------------------- #
# Params / reference
# --------------------------------------------------------------------------- #
def init_params(key, input_dim, action_dim, density):
    """Deterministic init mirroring PyTorch nn.Linear default:
    U(-1/sqrt(fan_in), 1/sqrt(fan_in)) for weight and bias.
    Weights stored transposed: (in_features, out_features)."""
    dims = [(input_dim, density), (density, density), (density, density),
            (density, density), (density, action_dim)]
    params = {}
    for idx, (fan_in, fan_out) in enumerate(dims, start=1):
        key, kw, kb = jax.random.split(key, 3)
        bound = 1.0 / jnp.sqrt(jnp.float32(fan_in))
        params[f"w{idx}"] = jax.random.uniform(
            kw, (fan_in, fan_out), jnp.float32, minval=-bound, maxval=bound)
        params[f"b{idx}"] = jax.random.uniform(
            kb, (1, fan_out), jnp.float32, minval=-bound, maxval=bound)
    return params


def ddqn_forward_ref(x, params):
    """Pure-JAX f32 reference for correctness checking."""
    h = jax.nn.relu(x @ params["w1"] + params["b1"])
    h = jax.nn.relu(h @ params["w2"] + params["b2"])
    h = jax.nn.relu(h @ params["w3"] + params["b3"])
    h = jax.nn.relu(h @ params["w4"] + params["b4"])
    return jnp.tanh(h @ params["w5"] + params["b5"])


# --------------------------------------------------------------------------- #
# Demo / self-check
# --------------------------------------------------------------------------- #
if __name__ == "__main__":
    batch = 256          # >= 2 grid steps -> both v7x TensorCores busy
    input_dim = 32       # state / observation dimension
    density = 200        # deliberately NOT a multiple of 128 (exercises padding)
    action_dim = 8       # number of discrete actions

    key = jax.random.PRNGKey(0)
    key, kx = jax.random.split(key)
    x = jax.random.normal(kx, (batch, input_dim), jnp.float32)

    params = init_params(key, input_dim, action_dim, density)
    ref = ddqn_forward_ref(x, params)

    # f32 compute path: tight (not bit-exact) check against the XLA reference.
    out_f32 = jax.block_until_ready(
        ddqn_forward(x, params, compute_dtype=jnp.float32))
    assert out_f32.shape == (batch, action_dim)
    assert jnp.allclose(out_f32, ref, atol=1e-4, rtol=1e-4), "f32 mismatch vs reference"

    # bf16-operand / f32-accumulate path (default, recommended on v5e/v6e/v7x).
    out_bf16 = jax.block_until_ready(ddqn_forward(x, params))
    assert out_bf16.shape == (batch, action_dim)
    assert jnp.allclose(out_bf16, ref, atol=5e-2, rtol=5e-2), "bf16 mismatch vs reference"

    # Small-batch latency path: single shrunken tile (no padding to 256 rows).
    out_small = jax.block_until_ready(ddqn_forward(x[:17], params))
    assert out_small.shape == (17, action_dim)
    assert jnp.allclose(out_small, ref[:17], atol=5e-2, rtol=5e-2), "small-batch mismatch"

    print("KERNEL_OK")
</pallas_src>

<mosaic_0001>
module attributes {stable_mosaic.version = 11 : i64} {
  func.func @ddqn_kernel(%arg0: i32, %arg1: memref<128x32xf32, #tpu.memory_space<vmem>>, %arg2: memref<32x256xf32, #tpu.memory_space<vmem>>, %arg3: memref<1x256xf32, #tpu.memory_space<vmem>>, %arg4: memref<256x256xf32, #tpu.memory_space<vmem>>, %arg5: memref<1x256xf32, #tpu.memory_space<vmem>>, %arg6: memref<256x256xf32, #tpu.memory_space<vmem>>, %arg7: memref<1x256xf32, #tpu.memory_space<vmem>>, %arg8: memref<256x256xf32, #tpu.memory_space<vmem>>, %arg9: memref<1x256xf32, #tpu.memory_space<vmem>>, %arg10: memref<256x128xf32, #tpu.memory_space<vmem>>, %arg11: memref<1x128xf32, #tpu.memory_space<vmem>>, %arg12: memref<128x128xf32, #tpu.memory_space<vmem>>) attributes {dimension_semantics = [#tpu.dimension_semantics<parallel>], iteration_bounds = array<i64: 2>, scalar_prefetch = 0 : i64, scratch_operands = 0 : i64, tpu.core_type = #tpu.core_type<tc>, window_params = [{transform_indices = @transform_0, window_bounds = array<i64: 128, 32>}, {pipeline_mode = #tpu.pipeline_mode<synchronous>, transform_indices = @transform_1, window_bounds = array<i64: 32, 256>}, {pipeline_mode = #tpu.pipeline_mode<synchronous>, transform_indices = @transform_2, window_bounds = array<i64: 1, 256>}, {pipeline_mode = #tpu.pipeline_mode<synchronous>, transform_indices = @transform_3, window_bounds = array<i64: 256, 256>}, {pipeline_mode = #tpu.pipeline_mode<synchronous>, transform_indices = @transform_4, window_bounds = array<i64: 1, 256>}, {pipeline_mode = #tpu.pipeline_mode<synchronous>, transform_indices = @transform_5, window_bounds = array<i64: 256, 256>}, {pipeline_mode = #tpu.pipeline_mode<synchronous>, transform_indices = @transform_6, window_bounds = array<i64: 1, 256>}, {pipeline_mode = #tpu.pipeline_mode<synchronous>, transform_indices = @transform_7, window_bounds = array<i64: 256, 256>}, {pipeline_mode = #tpu.pipeline_mode<synchronous>, transform_indices = @transform_8, window_bounds = array<i64: 1, 256>}, {pipeline_mode = #tpu.pipeline_mode<synchronous>, transform_indices = @transform_9, window_bounds = array<i64: 256, 128>}, {pipeline_mode = #tpu.pipeline_mode<synchronous>, transform_indices = @transform_10, window_bounds = array<i64: 1, 128>}, {transform_indices = @transform_11, window_bounds = array<i64: 128, 128>}]} {
    %c0 = arith.constant 0 : index
    %c0_0 = arith.constant 0 : index
    %0 = vector.load %arg1[%c0, %c0_0] : memref<128x32xf32, #tpu.memory_space<vmem>>, vector<128x32xf32>
    %c0_1 = arith.constant 0 : index
    %c0_2 = arith.constant 0 : index
    %1 = vector.load %arg2[%c0_1, %c0_2] : memref<32x256xf32, #tpu.memory_space<vmem>>, vector<32x256xf32>
    %cst = arith.constant dense<0.000000e+00> : vector<128x256xf32>
    %2 = tpu.matmul %0, %1, %cst {dimension_numbers = #tpu.dot_dimension_numbers<[1], [0], [0], [1], [0, 0, 1, 1], [], []>} : vector<128x32xf32>, vector<32x256xf32>, vector<128x256xf32> -> vector<128x256xf32>
    %c0_3 = arith.constant 0 : index
    %c0_4 = arith.constant 0 : index
    %3 = vector.load %arg3[%c0_3, %c0_4] : memref<1x256xf32, #tpu.memory_space<vmem>>, vector<1x256xf32>
    %4 = vector.broadcast %3 : vector<1x256xf32> to vector<128x256xf32>
    %5 = arith.addf %2, %4 : vector<128x256xf32>
    %cst_5 = arith.constant 0.000000e+00 : f32
    %6 = vector.broadcast %cst_5 : f32 to vector<128x256xf32>
    %7 = arith.maximumf %5, %6 : vector<128x256xf32>
    %c0_6 = arith.constant 0 : index
    %c0_7 = arith.constant 0 : index
    %8 = vector.load %arg4[%c0_6, %c0_7] : memref<256x256xf32, #tpu.memory_space<vmem>>, vector<256x256xf32>
    %cst_8 = arith.constant dense<0.000000e+00> : vector<128x256xf32>
    %9 = tpu.matmul %7, %8, %cst_8 {dimension_numbers = #tpu.dot_dimension_numbers<[1], [0], [0], [1], [0, 0, 1, 1], [], []>} : vector<128x256xf32>, vector<256x256xf32>, vector<128x256xf32> -> vector<128x256xf32>
    %c0_9 = arith.constant 0 : index
    %c0_10 = arith.constant 0 : index
    %10 = vector.load %arg5[%c0_9, %c0_10] : memref<1x256xf32, #tpu.memory_space<vmem>>, vector<1x256xf32>
    %11 = vector.broadcast %10 : vector<1x256xf32> to vector<128x256xf32>
    %12 = arith.addf %9, %11 : vector<128x256xf32>
    %cst_11 = arith.constant 0.000000e+00 : f32
    %13 = vector.broadcast %cst_11 : f32 to vector<128x256xf32>
    %14 = arith.maximumf %12, %13 : vector<128x256xf32>
    %c0_12 = arith.constant 0 : index
    %c0_13 = arith.constant 0 : index
    %15 = vector.load %arg6[%c0_12, %c0_13] : memref<256x256xf32, #tpu.memory_space<vmem>>, vector<256x256xf32>
    %cst_14 = arith.constant dense<0.000000e+00> : vector<128x256xf32>
    %16 = tpu.matmul %14, %15, %cst_14 {dimension_numbers = #tpu.dot_dimension_numbers<[1], [0], [0], [1], [0, 0, 1, 1], [], []>} : vector<128x256xf32>, vector<256x256xf32>, vector<128x256xf32> -> vector<128x256xf32>
    %c0_15 = arith.constant 0 : index
    %c0_16 = arith.constant 0 : index
    %17 = vector.load %arg7[%c0_15, %c0_16] : memref<1x256xf32, #tpu.memory_space<vmem>>, vector<1x256xf32>
    %18 = vector.broadcast %17 : vector<1x256xf32> to vector<128x256xf32>
    %19 = arith.addf %16, %18 : vector<128x256xf32>
    %cst_17 = arith.constant 0.000000e+00 : f32
    %20 = vector.broadcast %cst_17 : f32 to vector<128x256xf32>
    %21 = arith.maximumf %19, %20 : vector<128x256xf32>
    %c0_18 = arith.constant 0 : index
    %c0_19 = arith.constant 0 : index
    %22 = vector.load %arg8[%c0_18, %c0_19] : memref<256x256xf32, #tpu.memory_space<vmem>>, vector<256x256xf32>
    %cst_20 = arith.constant dense<0.000000e+00> : vector<128x256xf32>
    %23 = tpu.matmul %21, %22, %cst_20 {dimension_numbers = #tpu.dot_dimension_numbers<[1], [0], [0], [1], [0, 0, 1, 1], [], []>} : vector<128x256xf32>, vector<256x256xf32>, vector<128x256xf32> -> vector<128x256xf32>
    %c0_21 = arith.constant 0 : index
    %c0_22 = arith.constant 0 : index
    %24 = vector.load %arg9[%c0_21, %c0_22] : memref<1x256xf32, #tpu.memory_space<vmem>>, vector<1x256xf32>
    %25 = vector.broadcast %24 : vector<1x256xf32> to vector<128x256xf32>
    %26 = arith.addf %23, %25 : vector<128x256xf32>
    %cst_23 = arith.constant 0.000000e+00 : f32
    %27 = vector.broadcast %cst_23 : f32 to vector<128x256xf32>
    %28 = arith.maximumf %26, %27 : vector<128x256xf32>
    %c0_24 = arith.constant 0 : index
    %c0_25 = arith.constant 0 : index
    %29 = vector.load %arg10[%c0_24, %c0_25] : memref<256x128xf32, #tpu.memory_space<vmem>>, vector<256x128xf32>
    %cst_26 = arith.constant dense<0.000000e+00> : vector<128x128xf32>
    %30 = tpu.matmul %28, %29, %cst_26 {dimension_numbers = #tpu.dot_dimension_numbers<[1], [0], [0], [1], [0, 0, 1, 1], [], []>} : vector<128x256xf32>, vector<256x128xf32>, vector<128x128xf32> -> vector<128x128xf32>
    %c0_27 = arith.constant 0 : index
    %c0_28 = arith.constant 0 : index
    %31 = vector.load %arg11[%c0_27, %c0_28] : memref<1x128xf32, #tpu.memory_space<vmem>>, vector<1x128xf32>
    %32 = vector.broadcast %31 : vector<1x128xf32> to vector<128x128xf32>
    %33 = arith.addf %30, %32 : vector<128x128xf32>
    %34 = math.tanh %33 : vector<128x128xf32>
    %c0_29 = arith.constant 0 : index
    %c0_30 = arith.constant 0 : index
    %35 = vector.load %arg12[%c0_29, %c0_30] : memref<128x128xf32, #tpu.memory_space<vmem>>, vector<128x128xf32>
    tpu.vector_store %arg12[%c0_29, %c0_30], %34 {strides = array<i32>} : memref<128x128xf32, #tpu.memory_space<vmem>>, vector<128x128xf32>,
    return
  }
  func.func @transform_0(%arg0: i32) -> (i32, i32) {
    %c0_i32 = arith.constant 0 : i32
    %c0_i32_0 = arith.constant 0 : i32
    return %arg0, %c0_i32 : i32, i32
  }
  func.func @transform_1(%arg0: i32) -> (i32, i32) {
    %c0_i32 = arith.constant 0 : i32
    %c0_i32_0 = arith.constant 0 : i32
    %c0_i32_1 = arith.constant 0 : i32
    return %c0_i32, %c0_i32_0 : i32, i32
  }
  func.func @transform_2(%arg0: i32) -> (i32, i32) {
    %c0_i32 = arith.constant 0 : i32
    %c0_i32_0 = arith.constant 0 : i32
    %c0_i32_1 = arith.constant 0 : i32
    return %c0_i32, %c0_i32_0 : i32, i32
  }
  func.func @transform_3(%arg0: i32) -> (i32, i32) {
    %c0_i32 = arith.constant 0 : i32
    %c0_i32_0 = arith.constant 0 : i32
    %c0_i32_1 = arith.constant 0 : i32
    return %c0_i32, %c0_i32_0 : i32, i32
  }
  func.func @transform_4(%arg0: i32) -> (i32, i32) {
    %c0_i32 = arith.constant 0 : i32
    %c0_i32_0 = arith.constant 0 : i32
    %c0_i32_1 = arith.constant 0 : i32
    return %c0_i32, %c0_i32_0 : i32, i32
  }
  func.func @transform_5(%arg0: i32) -> (i32, i32) {
    %c0_i32 = arith.constant 0 : i32
    %c0_i32_0 = arith.constant 0 : i32
    %c0_i32_1 = arith.constant 0 : i32
    return %c0_i32, %c0_i32_0 : i32, i32
  }
  func.func @transform_6(%arg0: i32) -> (i32, i32) {
    %c0_i32 = arith.constant 0 : i32
    %c0_i32_0 = arith.constant 0 : i32
    %c0_i32_1 = arith.constant 0 : i32
    return %c0_i32, %c0_i32_0 : i32, i32
  }
  func.func @transform_7(%arg0: i32) -> (i32, i32) {
    %c0_i32 = arith.constant 0 : i32
    %c0_i32_0 = arith.constant 0 : i32
    %c0_i32_1 = arith.constant 0 : i32
    return %c0_i32, %c0_i32_0 : i32, i32
  }
  func.func @transform_8(%arg0: i32) -> (i32, i32) {
    %c0_i32 = arith.constant 0 : i32
    %c0_i32_0 = arith.constant 0 : i32
    %c0_i32_1 = arith.constant 0 : i32
    return %c0_i32, %c0_i32_0 : i32, i32
  }
  func.func @transform_9(%arg0: i32) -> (i32, i32) {
    %c0_i32 = arith.constant 0 : i32
    %c0_i32_0 = arith.constant 0 : i32
    %c0_i32_1 = arith.constant 0 : i32
    return %c0_i32, %c0_i32_0 : i32, i32
  }
  func.func @transform_10(%arg0: i32) -> (i32, i32) {
    %c0_i32 = arith.constant 0 : i32
    %c0_i32_0 = arith.constant 0 : i32
    %c0_i32_1 = arith.constant 0 : i32
    return %c0_i32, %c0_i32_0 : i32, i32
  }
  func.func @transform_11(%arg0: i32) -> (i32, i32) {
    %c0_i32 = arith.constant 0 : i32
    %c0_i32_0 = arith.constant 0 : i32
    return %arg0, %c0_i32 : i32, i32
  }
}

</mosaic_0001>

<bundles_post_ra>
// kernel: ddqn_forward.1
= control target key start
LH: loop header
LB: loop body
LE: loop exit
PB: predicated region body
PF: predicated region fallthrough
CT: control target
= control target key end

     0   :  { %s2213_s17 = smov 0   ;;  %s3242_s0 = inlined_call_operand.vmem [shape: f32[256,32], index: 0, kind: input, shape index: {}]   ;;  %s3243_s1 = inlined_call_operand.vmem [shape: f32[32,256], index: 1, kind: input, shape index: {}]   ;;  %s3244_s2 = inlined_call_operand.vmem [shape: f32[1,256], index: 2, kind: input, shape index: {}]   ;;  %s3245_s3 = inlined_call_operand.vmem [shape: f32[256,256], index: 3, kind: input, shape index: {}]   ;;  %s3246_s4 = inlined_call_operand.vmem [shape: f32[1,256], index: 4, kind: input, shape index: {}]   ;;  %s3247_s5 = inlined_call_operand.vmem [shape: f32[256,256], index: 5, kind: input, shape index: {}]   ;;  %s3248_s6 = inlined_call_operand.vmem [shape: f32[1,256], index: 6, kind: input, shape index: {}]   ;;  %s3249_s7 = inlined_call_operand.vmem [shape: f32[256,256], index: 7, kind: input, shape index: {}]   ;;  %s3250_s8 = inlined_call_operand.vmem [shape: f32[1,256], index: 8, kind: input, shape index: {}]   ;;  %s3251_s9 = inlined_call_operand.vmem [shape: f32[256,128], index: 9, kind: input, shape index: {}]   ;;  %s3252_s10 = inlined_call_operand.vmem [shape: f32[1,128], index: 10, kind: input, shape index: {}]   ;;  %s3253_s11 = inlined_call_operand.vmem [shape: f32[256,128], index: 11, kind: output, shape index: {}]  }
   0x1 LB: > { %s1747_s18 = sadd.s32 4294967295, %s2150_s17   ;;  %p1751_p0 = scmp.ge.s32.totalorder %s2150_s17, 1  ;;  %s2150_s17 = sphi %s2213_s17, %s21_s17  }
   0x2   : > { %p338_p1 = scmp.lt.s32.totalorder %s2150_s17, 3 }
   0x4   : > { %p339_p2 = pnand %p1751_p0, %p338_p1 }
   0x5   : > { %v407_v0 = vld [vmem:[%s3243_s1 + $0x8] sm:$0xff] (!%p339_p2)  ;;  %v409_v1 = vld [vmem:[%s3243_s1 + $0x18] sm:$0xff] (!%p339_p2)  ;;  %v406_v2 = vld [vmem:[%s3243_s1] sm:$0xff] (!%p339_p2)  ;;  %s1752_s25 = sshll.u32 (!%p339_p2), %s1747_s18, 4  ;;  %v2152_v7 = vmov (!%p339_p2), 0.0   ;;  %vm426_vm0 = vcmask (!%p339_p2), 261120  }
   0x6   : > { %342 = sbr.rel (%p339_p2) target bundleno = 1178 (0x49a), region = 64  ;;  %v1855_v3 = vpack.c.bf16 (!%p339_p2), %v409_v1, %v407_v0  ;;  %v408_v4 = vld [vmem:[%s3243_s1 + $0x10] sm:$0xff] (!%p339_p2)  ;;  %v411_v5 = vld [vmem:[%s3243_s1 + $0x28] sm:$0xff] (!%p339_p2)  ;;  %v413_v6 = vld [vmem:[%s3243_s1 + $0x38] sm:$0xff] (!%p339_p2)  ;;  %539 = vmatprep.mubr.f32.mxu0 (!%p339_p2), %v2152_v7  ;;  %p379_p3 = scmp.lt.s32.totalorder (!%p339_p2), %s1752_s25, 31 }
   0x7   : > { %v1857_v8 = vpack.c.bf16 (!%p339_p2), %v408_v4, %v406_v2  ;;  %v1859_v9 = vpack.c.bf16 (!%p339_p2), %v413_v6, %v411_v5  ;;  %v410_v10 = vld [vmem:[%s3243_s1 + $0x20] sm:$0xff] (!%p339_p2)  ;;  %v412_v11 = vld [vmem:[%s3243_s1 + $0x30] sm:$0xff] (!%p339_p2)  ;;  %v669_v12 = vld [vmem:[%s3245_s3 + $0x8] sm:$0xff] (!%p339_p2) }
   0x8   : > { %1856 = vmatprep.subr.bf16.mxu0 (!%p339_p2), %v1855_v3  ;;  %v671_v13 = vld [vmem:[%s3245_s3 + $0x18] sm:$0xff] (!%p339_p2)  ;;  %v668_v14 = vld [vmem:[%s3245_s3] sm:$0xff] (!%p339_p2)  ;;  %v670_v15 = vld [vmem:[%s3245_s3 + $0x10] sm:$0xff] (!%p339_p2)  ;;  %v1861_v16 = vpack.c.bf16 (!%p339_p2), %v412_v11, %v410_v10 }
   0x9   : > { %1858 = vmatpush1.bf16.msra.mxu0 (!%p339_p2), %v1857_v8  ;;  %v1863_v17 = vpack.c.bf16 (!%p339_p2), %v671_v13, %v669_v12  ;;  %v1865_v18 = vpack.c.bf16 (!%p339_p2), %v670_v15, %v668_v14  ;;  %v673_v19 = vld [vmem:[%s3245_s3 + $0x28] sm:$0xff] (!%p339_p2)  ;;  %v675_v20 = vld [vmem:[%s3245_s3 + $0x38] sm:$0xff] (!%p339_p2)  ;;  %v672_v21 = vld [vmem:[%s3245_s3 + $0x20] sm:$0xff] (!%p339_p2) }
   0xa   : > { %1860 = vmatprep.subr.bf16.mxu0 (!%p339_p2), %v1859_v9  ;;  %v1867_v22 = vpack.c.bf16 (!%p339_p2), %v675_v20, %v673_v19  ;;  %v674_v23 = vld [vmem:[%s3245_s3 + $0x30] sm:$0xff] (!%p339_p2)  ;;  %v677_v24 = vld [vmem:[%s3245_s3 + $0x48] sm:$0xff] (!%p339_p2)  ;;  %v679_v25 = vld [vmem:[%s3245_s3 + $0x58] sm:$0xff] (!%p339_p2) }
   0xb   : > { %1864 = vmatprep.subr.bf16.mxu1 (!%p339_p2), %v1863_v17  ;;  %v1869_v26 = vpack.c.bf16 (!%p339_p2), %v674_v23, %v672_v21  ;;  %v1871_v28 = vpack.c.bf16 (!%p339_p2), %v679_v25, %v677_v24  ;;  %v676_v29 = vld [vmem:[%s3245_s3 + $0x40] sm:$0xff] (!%p339_p2)  ;;  %v678_v30 = vld [vmem:[%s3245_s3 + $0x50] sm:$0xff] (!%p339_p2)  ;;  %v681_v31 = vld [vmem:[%s3245_s3 + $0x68] sm:$0xff] (!%p339_p2) }
   0xc   : > { %1866 = vmatpush1.bf16.msra.mxu1 (!%p339_p2), %v1865_v18  ;;  %v1873_v32 = vpack.c.bf16 (!%p339_p2), %v678_v30, %v676_v29  ;;  %v683_v34 = vld [vmem:[%s3245_s3 + $0x78] sm:$0xff] (!%p339_p2)  ;;  %v680_v35 = vld [vmem:[%s3245_s3 + $0x60] sm:$0xff] (!%p339_p2)  ;;  %v682_v37 = vld [vmem:[%s3245_s3 + $0x70] sm:$0xff] (!%p339_p2) }
   0xd   : > { %s3255_s25 = smov (!%p379_p3, %s1752_s25), 31  ;;  %1862 = vmatpush1.bf16.msra.mxu0 %v1861_v16  ;;  %1868 = vmatprep.subr.bf16.mxu1 %v1867_v22  ;;  %v1875_v36 = vpack.c.bf16 %v683_v34, %v681_v31  ;;  %v685_v38 = vld [vmem:[%s3245_s3 + $0x88] sm:$0xff]  ;;  %v687_v39 = vld [vmem:[%s3245_s3 + $0x98] sm:$0xff]  ;;  %v1877_v40 = vpack.c.bf16 %v682_v37, %v680_v35  ;;  %v684_v43 = vld [vmem:[%s3245_s3 + $0x80] sm:$0xff] }
   0xe   : > { %s1753_s14 = sshll.u32 %s3255_s25, 3  ;;  %v1879_v42 = vpack.c.bf16 %v687_v39, %v685_v38  ;;  %v686_v44 = vld [vmem:[%s3245_s3 + $0x90] sm:$0xff]  ;;  %v689_v45 = vld [vmem:[%s3245_s3 + $0xa8] sm:$0xff]  ;;  %v691_v46 = vld [vmem:[%s3245_s3 + $0xb8] sm:$0xff] }
   0xf   : > { %s2284_s24 = scalar_lea.vmem %s3242_s0, %s1753_s14  ;;  %v1881_v47 = vpack.c.bf16 %v686_v44, %v684_v43  ;;  %v1883_v49 = vpack.c.bf16 %v691_v46, %v689_v45  ;;  %v688_v50 = vld [vmem:[%s3245_s3 + $0xa0] sm:$0xff]  ;;  %v690_v51 = vld [vmem:[%s3245_s3 + $0xb0] sm:$0xff]  ;;  %v693_v52 = vld [vmem:[%s3245_s3 + $0xc8] sm:$0xff] }
  0x10   : > { %v390_v27 = vld [vmem:[%s2284_s24] sm:$0xff]  ;;  %1870 = vmatpush1.bf16.msra.mxu1 %v1869_v26  ;;  %v391_v33 = vld [vmem:[%s2284_s24 + $0x8] sm:$0xff]  ;;  %v392_v41 = vld [vmem:[%s2284_s24 + $0x10] sm:$0xff]  ;;  %v1885_v54 = vpack.c.bf16 %v690_v51, %v688_v50 }
  0x11   : > { %1756 = vmatmul.mubr.msk.f32.vlgmr.msra.gmra.mrb[0].mxu0 %vm426_vm0, %v390_v27  ;;  %1872 = vmatprep.subr.bf16.mxu1 %v1871_v28  ;;  %v393_v48 = vld [vmem:[%s2284_s24 + $0x18] sm:$0xff]  ;;  %v394_v55 = vld [vmem:[%s2284_s24 + $0x20] sm:$0xff]  ;;  %v694_v58 = vld [vmem:[%s3245_s3 + $0xd0] sm:$0xff] }
  0x12   : > { %545 = vmatprep.mubr.f32.mxu0 %v2152_v7  ;;  %v695_v53 = vld [vmem:[%s3245_s3 + $0xd8] sm:$0xff]  ;;  %v692_v57 = vld [vmem:[%s3245_s3 + $0xc0] sm:$0xff]  ;;  %v697_v59 = vld [vmem:[%s3245_s3 + $0xe8] sm:$0xff] }
  0x13   : > { %v1887_v56 = vpack.c.bf16 %v695_v53, %v693_v52  ;;  %v699_v60 = vld [vmem:[%s3245_s3 + $0xf8] sm:$0xff]  ;;  %v1889_v61 = vpack.c.bf16 %v694_v58, %v692_v57  ;;  %v395_v62 = vld [vmem:[%s2284_s24 + $0x28] sm:$0xff]  ;;  %v696_v0 = vld [vmem:[%s3245_s3 + $0xe0] sm:$0xff] }
  0x14   : > { %1874 = vmatpush1.bf16.msra.mxu1 %v1873_v32  ;;  %v1891_v63 = vpack.c.bf16 %v699_v60, %v697_v59  ;;  %v698_v1 = vld [vmem:[%s3245_s3 + $0xf0] sm:$0xff]  ;;  %v701_v2 = vld [vmem:[%s3245_s3 + $0x108] sm:$0xff]  ;;  %v703_v3 = vld [vmem:[%s3245_s3 + $0x118] sm:$0xff] }
  0x15   : > { %1757 = vmatmul.mubr.msk.f32.gmra.mrb[2].mxu0 %vm426_vm0, %v391_v33  ;;  %1876 = vmatprep.subr.bf16.mxu1 %v1875_v36  ;;  %v1893_v4 = vpack.c.bf16 %v698_v1, %v696_v0  ;;  %v396_v5 = vld [vmem:[%s2284_s24 + $0x30] sm:$0xff]  ;;  %v1895_v6 = vpack.c.bf16 %v703_v3, %v701_v2  ;;  %v700_v8 = vld [vmem:[%s3245_s3 + $0x100] sm:$0xff]  ;;  %v705_v10 = vld [vmem:[%s3245_s3 + $0x128] sm:$0xff] }
  0x16   : > { %551 = vmatprep.mubr.f32.mxu0 %v2152_v7  ;;  %v702_v9 = vld [vmem:[%s3245_s3 + $0x110] sm:$0xff]  ;;  %v707_v11 = vld [vmem:[%s3245_s3 + $0x138] sm:$0xff]  ;;  %v704_v15 = vld [vmem:[%s3245_s3 + $0x120] sm:$0xff] }
  0x17   : > { %v1897_v12 = vpack.c.bf16 %v702_v9, %v700_v8  ;;  %v397_v13 = vld [vmem:[%s2284_s24 + $0x38] sm:$0xff]  ;;  %v1899_v14 = vpack.c.bf16 %v707_v11, %v705_v10  ;;  %v706_v16 = vld [vmem:[%s3245_s3 + $0x130] sm:$0xff]  ;;  %v709_v17 = vld [vmem:[%s3245_s3 + $0x148] sm:$0xff] }
  0x18   : > { %1878 = vmatpush1.bf16.msra.mxu1 %v1877_v40  ;;  %v711_v18 = vld [vmem:[%s3245_s3 + $0x158] sm:$0xff]  ;;  %v1901_v19 = vpack.c.bf16 %v706_v16, %v704_v15  ;;  %v398_v20 = vld [vmem:[%s2284_s24 + $0x40] sm:$0xff]  ;;  %v710_v23 = vld [vmem:[%s3245_s3 + $0x150] sm:$0xff] }
  0x19   : > { %1758 = vmatmul.mubr.msk.f32.gmra.mrb[4].mxu0 %vm426_vm0, %v392_v41  ;;  %1880 = vmatprep.subr.bf16.mxu1 %v1879_v42  ;;  %v1903_v21 = vpack.c.bf16 %v711_v18, %v709_v17  ;;  %v708_v22 = vld [vmem:[%s3245_s3 + $0x140] sm:$0xff]  ;;  %v713_v24 = vld [vmem:[%s3245_s3 + $0x168] sm:$0xff]  ;;  %v715_v25 = vld [vmem:[%s3245_s3 + $0x178] sm:$0xff] }
  0x1a   : > { %557 = vmatprep.mubr.f32.mxu0 %v2152_v7  ;;  %v1905_v26 = vpack.c.bf16 %v710_v23, %v708_v22  ;;  %v399_v27 = vld [vmem:[%s2284_s24 + $0x48] sm:$0xff]  ;;  %v1907_v28 = vpack.c.bf16 %v715_v25, %v713_v24  ;;  %v712_v29 = vld [vmem:[%s3245_s3 + $0x160] sm:$0xff]  ;;  %v714_v30 = vld [vmem:[%s3245_s3 + $0x170] sm:$0xff] }
  0x1b   : > { %v717_v31 = vld [vmem:[%s3245_s3 + $0x188] sm:$0xff]  ;;  %v719_v32 = vld [vmem:[%s3245_s3 + $0x198] sm:$0xff]  ;;  %v1909_v33 = vpack.c.bf16 %v714_v30, %v712_v29  ;;  %v400_v34 = vld [vmem:[%s2284_s24 + $0x50] sm:$0xff] }
  0x1c   : > { %1882 = vmatpush1.bf16.msra.mxu1 %v1881_v47  ;;  %v1911_v35 = vpack.c.bf16 %v719_v32, %v717_v31  ;;  %v716_v36 = vld [vmem:[%s3245_s3 + $0x180] sm:$0xff]  ;;  %v718_v37 = vld [vmem:[%s3245_s3 + $0x190] sm:$0xff]  ;;  %v721_v38 = vld [vmem:[%s3245_s3 + $0x1a8] sm:$0xff] }
  0x1d   : > { %1759 = vmatmul.mubr.msk.f32.gmra.mrb[6].mxu0 %vm426_vm0, %v393_v48  ;;  %1884 = vmatprep.subr.bf16.mxu1 %v1883_v49  ;;  %v723_v39 = vld [vmem:[%s3245_s3 + $0x1b8] sm:$0xff]  ;;  %v1913_v40 = vpack.c.bf16 %v718_v37, %v716_v36  ;;  %v720_v43 = vld [vmem:[%s3245_s3 + $0x1a0] sm:$0xff]  ;;  %v722_v44 = vld [vmem:[%s3245_s3 + $0x1b0] sm:$0xff] }
  0x1e   : > { %563 = vmatprep.mubr.f32.mxu0 %v2152_v7  ;;  %v401_v41 = vld [vmem:[%s2284_s24 + $0x58] sm:$0xff]  ;;  %v1915_v42 = vpack.c.bf16 %v723_v39, %v721_v38  ;;  %v725_v45 = vld [vmem:[%s3245_s3 + $0x1c8] sm:$0xff]  ;;  %v1917_v47 = vpack.c.bf16 %v722_v44, %v720_v43  ;;  %v402_v48 = vld [vmem:[%s2284_s24 + $0x60] sm:$0xff] }
  0x1f   : > { %v727_v46 = vld [vmem:[%s3245_s3 + $0x1d8] sm:$0xff]  ;;  %v403_v50 = vld [vmem:[%s2284_s24 + $0x68] sm:$0xff]  ;;  %v404_v51 = vld [vmem:[%s2284_s24 + $0x70] sm:$0xff] }
  0x20   : > { %1886 = vmatpush1.bf16.msra.mxu1 %v1885_v54  ;;  %v1919_v49 = vpack.c.bf16 %v727_v46, %v725_v45  ;;  %v405_v52 = vld [vmem:[%s2284_s24 + $0x78] sm:$0xff]  ;;  %v724_v53 = vld [vmem:[%s3245_s3 + $0x1c0] sm:$0xff]  ;;  %v726_v54 = vld [vmem:[%s3245_s3 + $0x1d0] sm:$0xff]  ;;  %s3208_s24 = scalar_lea.vmem %s3253_s11, %s1753_s14 }
  0x21   : > { %1760 = vmatmul.mubr.msk.f32.gmra.mrb[8].mxu0 %vm426_vm0, %v394_v55  ;;  %1888 = vmatprep.subr.bf16.mxu1 %v1887_v56  ;;  %v1921_v55 = vpack.c.bf16 %v726_v54, %v724_v53  ;;  %v729_v56 = vld [vmem:[%s3245_s3 + $0x1e8] sm:$0xff]  ;;  %v728_v58 = vld [vmem:[%s3245_s3 + $0x1e0] sm:$0xff]  ;;  %v730_v59 = vld [vmem:[%s3245_s3 + $0x1f0] sm:$0xff] }
  0x22   : > { %569 = vmatprep.mubr.f32.mxu0 %v2152_v7  ;;  %v1925_v60 = vpack.c.bf16 %v730_v59, %v728_v58  ;;  %v939_v1 = vld [vmem:[%s3247_s5 + $0x10] sm:$0xff]  ;;  %v942_v2 = vld [vmem:[%s3247_s5 + $0x28] sm:$0xff]  ;;  %v944_v3 = vld [vmem:[%s3247_s5 + $0x38] sm:$0xff] }
  0x23   : > { %v943_v8 = vld [vmem:[%s3247_s5 + $0x30] sm:$0xff]  ;;  %v946_v9 = vld [vmem:[%s3247_s5 + $0x48] sm:$0xff]  ;;  %v948_v10 = vld [vmem:[%s3247_s5 + $0x58] sm:$0xff] }
  0x24   : > { %1890 = vmatpush1.bf16.msra.mxu1 %v1889_v61  ;;  %v938_v61 = vld [vmem:[%s3247_s5 + $0x8] sm:$0xff]  ;;  %v952_v16 = vld [vmem:[%s3247_s5 + $0x78] sm:$0xff]  ;;  %v953_v25 = vld [vmem:[%s3247_s5 + $0x80] sm:$0xff] }
  0x25   : > { %1761 = vmatmul.mubr.msk.f32.gmra.mrb[10].mxu0 %vm426_vm0, %v395_v62  ;;  %1892 = vmatprep.subr.bf16.mxu1 %v1891_v63  ;;  %v940_v62 = vld [vmem:[%s3247_s5 + $0x18] sm:$0xff]  ;;  %v937_v63 = vld [vmem:[%s3247_s5] sm:$0xff]  ;;  %v950_v15 = vld [vmem:[%s3247_s5 + $0x68] sm:$0xff] }
  0x26   : > { %575 = vmatprep.mubr.f32.mxu0 %v2152_v7  ;;  %v1927_v0 = vpack.c.bf16 %v940_v62, %v938_v61  ;;  %v1939_v18 = vpack.c.bf16 %v952_v16, %v950_v15  ;;  %v956_v22 = vld [vmem:[%s3247_s5 + $0x98] sm:$0xff]  ;;  %v957_v31 = vld [vmem:[%s3247_s5 + $0xa0] sm:$0xff]  ;;  %v959_v32 = vld [vmem:[%s3247_s5 + $0xb0] sm:$0xff] }
  0x27   : > { %v961_v37 = vld [vmem:[%s3247_s5 + $0xc0] sm:$0xff]  ;;  %v963_v38 = vld [vmem:[%s3247_s5 + $0xd0] sm:$0xff]  ;;  %v966_v39 = vld [vmem:[%s3247_s5 + $0xe8] sm:$0xff] }
  0x28   : > { %1894 = vmatpush1.bf16.msra.mxu1 %v1893_v4  ;;  %v1929_v4 = vpack.c.bf16 %v939_v1, %v937_v63  ;;  %1928 = vmatprep.subr.bf16.mxu0 %v1927_v0  ;;  %v965_v43 = vld [vmem:[%s3247_s5 + $0xe0] sm:$0xff]  ;;  %v967_v44 = vld [vmem:[%s3247_s5 + $0xf0] sm:$0xff]  ;;  %v970_v45 = vld [vmem:[%s3247_s5 + $0x108] sm:$0xff] }
  0x29   : > { %1762 = vmatmul.mubr.msk.f32.gmra.mrb[12].mxu0 %vm426_vm0, %v396_v5  ;;  %1896 = vmatprep.subr.bf16.mxu1 %v1895_v6  ;;  %v1931_v5 = vpack.c.bf16 %v944_v3, %v942_v2  ;;  %v941_v6 = vld [vmem:[%s3247_s5 + $0x20] sm:$0xff]  ;;  %v972_v46 = vld [vmem:[%s3247_s5 + $0x118] sm:$0xff]  ;;  %v979_v61 = vld [vmem:[%s3247_s5 + $0x150] sm:$0xff] }
  0x2a   : > { %581 = vmatprep.mubr.f32.mxu0 %v2152_v7  ;;  %1930 = vmatpush1.bf16.msra.mxu0 %v1929_v4  ;;  %v1933_v11 = vpack.c.bf16 %v943_v8, %v941_v6  ;;  %v982_v62 = vld [vmem:[%s3247_s5 + $0x168] sm:$0xff]  ;;  %v984_v63 = vld [vmem:[%s3247_s5 + $0x178] sm:$0xff]  ;;  %v981_v2 = vld [vmem:[%s3247_s5 + $0x160] sm:$0xff] }
  0x2b   : > { %1932 = vmatprep.subr.bf16.mxu0 %v1931_v5  ;;  %v1971_v1 = vpack.c.bf16 %v984_v63, %v982_v62  ;;  %v983_v3 = vld [vmem:[%s3247_s5 + $0x170] sm:$0xff]  ;;  %v986_v4 = vld [vmem:[%s3247_s5 + $0x188] sm:$0xff]  ;;  %v988_v5 = vld [vmem:[%s3247_s5 + $0x198] sm:$0xff] }
  0x2c   : > { %1898 = vmatpush1.bf16.msra.mxu1 %v1897_v12  ;;  %v1935_v12 = vpack.c.bf16 %v948_v10, %v946_v9  ;;  %v1973_v6 = vpack.c.bf16 %v983_v3, %v981_v2  ;;  %v1975_v8 = vpack.c.bf16 %v988_v5, %v986_v4  ;;  %v985_v9 = vld [vmem:[%s3247_s5 + $0x180] sm:$0xff]  ;;  %v987_v10 = vld [vmem:[%s3247_s5 + $0x190] sm:$0xff] }
  0x2d   : > { %1763 = vmatmul.mubr.msk.f32.gmra.mrb[14].mxu0 %vm426_vm0, %v397_v13  ;;  %1900 = vmatprep.subr.bf16.mxu1 %v1899_v14  ;;  %v945_v13 = vld [vmem:[%s3247_s5 + $0x40] sm:$0xff]  ;;  %v947_v14 = vld [vmem:[%s3247_s5 + $0x50] sm:$0xff] }
  0x2e   : > { %587 = vmatprep.mubr.f32.mxu0 %v2152_v7  ;;  %1934 = vmatpush1.bf16.msra.mxu0 %v1933_v11  ;;  %v1937_v17 = vpack.c.bf16 %v947_v14, %v945_v13  ;;  %v416_v11 = vlaneseq  ;;  %v992_v13 = vld [vmem:[%s3247_s5 + $0x1b8] sm:$0xff]  ;;  %v1977_v14 = vpack.c.bf16 %v987_v10, %v985_v9  ;;  %v989_v16 = vld [vmem:[%s3247_s5 + $0x1a0] sm:$0xff] }
  0x2f   : > { %1936 = vmatprep.subr.bf16.mxu0 %v1935_v12  ;;  %v990_v12 = vld [vmem:[%s3247_s5 + $0x1a8] sm:$0xff] }
  0x30   : > { %1902 = vmatpush1.bf16.msra.mxu1 %v1901_v19  ;;  %v949_v19 = vld [vmem:[%s3247_s5 + $0x60] sm:$0xff]  ;;  %v1979_v15 = vpack.c.bf16 %v992_v13, %v990_v12 }
  0x31   : > { %1764 = vmatmul.mubr.msk.f32.gmra.mrb[16].mxu0 %vm426_vm0, %v398_v20  ;;  %1904 = vmatprep.subr.bf16.mxu1 %v1903_v21  ;;  %v951_v20 = vld [vmem:[%s3247_s5 + $0x70] sm:$0xff]  ;;  %v954_v21 = vld [vmem:[%s3247_s5 + $0x88] sm:$0xff] }
  0x32   : > { %593 = vmatprep.mubr.f32.mxu0 %v2152_v7  ;;  %1938 = vmatpush1.bf16.msra.mxu0 %v1937_v17  ;;  %v1941_v23 = vpack.c.bf16 %v951_v20, %v949_v19  ;;  %v1943_v24 = vpack.c.bf16 %v956_v22, %v954_v21  ;;  %v991_v17 = vld [vmem:[%s3247_s5 + $0x1b0] sm:$0xff]  ;;  %v994_v19 = vld [vmem:[%s3247_s5 + $0x1c8] sm:$0xff]  ;;  %v996_v20 = vld [vmem:[%s3247_s5 + $0x1d8] sm:$0xff] }
  0x33   : > { %1940 = vmatprep.subr.bf16.mxu0 %v1939_v18  ;;  %v417_v18 = vshrl.u32 %v416_v11, 7  ;;  %v1981_v21 = vpack.c.bf16 %v991_v17, %v989_v16  ;;  %v1983_v22 = vpack.c.bf16 %v996_v20, %v994_v19 }
  0x34   : > { %1906 = vmatpush1.bf16.msra.mxu1 %v1905_v26  ;;  %v955_v26 = vld [vmem:[%s3247_s5 + $0x90] sm:$0xff] }
  0x35   : > { %1765 = vmatmul.mubr.msk.f32.gmra.mrb[18].mxu0 %vm426_vm0, %v399_v27  ;;  %1908 = vmatprep.subr.bf16.mxu1 %v1907_v28  ;;  %v958_v27 = vld [vmem:[%s3247_s5 + $0xa8] sm:$0xff]  ;;  %v960_v28 = vld [vmem:[%s3247_s5 + $0xb8] sm:$0xff]  ;;  %v1945_v29 = vpack.c.bf16 %v955_v26, %v953_v25  ;;  %v2675_v25 = vsub.s32 0, %v417_v18  ;;  %v414_v26 = vld [vmem:[%s3244_s2] sm:$0x3] }
  0x36   : > { %599 = vmatprep.mubr.f32.mxu0 %v2152_v7  ;;  %1942 = vmatpush1.bf16.msra.mxu0 %v1941_v23  ;;  %v1947_v30 = vpack.c.bf16 %v960_v28, %v958_v27  ;;  %v993_v23 = vld [vmem:[%s3247_s5 + $0x1c0] sm:$0xff]  ;;  %v2680_v27 = vsub.s32 1, %v417_v18 }
  0x37   : > { %1944 = vmatprep.subr.bf16.mxu0 %v1943_v24  ;;  %v995_v24 = vld [vmem:[%s3247_s5 + $0x1d0] sm:$0xff] }
  0x38   : > { %1910 = vmatpush1.bf16.msra.mxu1 %v1909_v33  ;;  %v962_v33 = vld [vmem:[%s3247_s5 + $0xc8] sm:$0xff]  ;;  %v1985_v28 = vpack.c.bf16 %v995_v24, %v993_v23 }
  0x39   : > { %1766 = vmatmul.mubr.msk.f32.gmra.mrb[20].mxu0 %vm426_vm0, %v400_v34  ;;  %1912 = vmatprep.subr.bf16.mxu1 %v1911_v35  ;;  %v964_v34 = vld [vmem:[%s3247_s5 + $0xd8] sm:$0xff]  ;;  %v1949_v35 = vpack.c.bf16 %v959_v32, %v957_v31 }
  0x3a   : > { %605 = vmatprep.mubr.f32.mxu0 %v2152_v7  ;;  %1946 = vmatpush1.bf16.msra.mxu0 %v1945_v29  ;;  %v1951_v36 = vpack.c.bf16 %v964_v34, %v962_v33  ;;  %v2683_v29 = vrot.slane %v414_v26, %v2675_v25 }
  0x3b   : > { %1948 = vmatprep.subr.bf16.mxu0 %v1947_v30  ;;  %v2686_v30 = vrot.slane %v414_v26, %v2680_v27 }
  0x3c   : > { %1914 = vmatpush1.bf16.msra.mxu1 %v1913_v40  ;;  %v968_v40 = vld [vmem:[%s3247_s5 + $0xf8] sm:$0xff] }
  0x3d   : > { %1767 = vmatmul.mubr.msk.f32.gmra.mrb[22].mxu0 %vm426_vm0, %v401_v41  ;;  %1916 = vmatprep.subr.bf16.mxu1 %v1915_v42  ;;  %v1953_v41 = vpack.c.bf16 %v963_v38, %v961_v37  ;;  %v1955_v42 = vpack.c.bf16 %v968_v40, %v966_v39 }
  0x3e   : > { %611 = vmatprep.mubr.f32.mxu0 %v2152_v7  ;;  %1950 = vmatpush1.bf16.msra.mxu0 %v1949_v35 }
  0x3f   : > { %1952 = vmatprep.subr.bf16.mxu0 %v1951_v36 }
  0x40   : > { %1918 = vmatpush1.bf16.msra.mxu1 %v1917_v47  ;;  %v1957_v47 = vpack.c.bf16 %v967_v44, %v965_v43 }
  0x41   : > { %1768 = vmatmul.mubr.msk.f32.gmra.mrb[24].mxu0 %vm426_vm0, %v402_v48  ;;  %1920 = vmatprep.subr.bf16.mxu1 %v1919_v49  ;;  %v1959_v48 = vpack.c.bf16 %v972_v46, %v970_v45  ;;  %v969_v49 = vld [vmem:[%s3247_s5 + $0x100] sm:$0xff] }
  0x42   : > { %617 = vmatprep.mubr.f32.mxu0 %v2152_v7  ;;  %1954 = vmatpush1.bf16.msra.mxu0 %v1953_v41 }
  0x43   : > { %1956 = vmatprep.subr.bf16.mxu0 %v1955_v42 }
  0x44   : > { %1922 = vmatpush1.bf16.msra.mxu1 %v1921_v55  ;;  %v973_v55 = vld [vmem:[%s3247_s5 + $0x120] sm:$0xff] }
  0x45   : > { %1769 = vmatmul.mubr.msk.f32.gmra.mrb[26].mxu0 %vm426_vm0, %v403_v50  ;;  %v971_v50 = vld [vmem:[%s3247_s5 + $0x110] sm:$0xff] }
  0x46   : > { %623 = vmatprep.mubr.f32.mxu0 %v2152_v7  ;;  %1958 = vmatpush1.bf16.msra.mxu0 %v1957_v47  ;;  %v1961_v53 = vpack.c.bf16 %v971_v50, %v969_v49 }
  0x47   : > { %1960 = vmatprep.subr.bf16.mxu0 %v1959_v48 }
  0x49   : > { %1770 = vmatmul.mubr.msk.f32.gmra.mrb[28].mxu0 %vm426_vm0, %v404_v51  ;;  %v974_v51 = vld [vmem:[%s3247_s5 + $0x128] sm:$0xff] }
  0x4a   : > { %629 = vmatprep.mubr.f32.mxu0 %v2152_v7  ;;  %v731_v7 = vld [vmem:[%s3245_s3 + $0x1f8] sm:$0xff]  ;;  %1962 = vmatpush1.bf16.msra.mxu0 %v1961_v53 }
  0x4b   : > { %v1923_v57 = vpack.c.bf16 %v731_v7, %v729_v56  ;;  %v975_v56 = vld [vmem:[%s3247_s5 + $0x130] sm:$0xff]  ;;  %v978_v7 = vld [vmem:[%s3247_s5 + $0x148] sm:$0xff] }
  0x4c   : > { %v1965_v58 = vpack.c.bf16 %v975_v56, %v973_v55 }
  0x4d   : > { %1771 = vmatmul.mubr.msk.f32.gmra.mrb[30].mxu0 %vm426_vm0, %v405_v52  ;;  %1924 = vmatprep.subr.bf16.mxu1 %v1923_v57  ;;  %v976_v52 = vld [vmem:[%s3247_s5 + $0x138] sm:$0xff] }
  0x4e   : > { %1926 = vmatpush1.bf16.msra.mxu1 %v1925_v60  ;;  %v1963_v54 = vpack.c.bf16 %v976_v52, %v974_v51  ;;  %v980_v57 = vld [vmem:[%s3247_s5 + $0x158] sm:$0xff]  ;;  %v977_v60 = vld [vmem:[%s3247_s5 + $0x140] sm:$0xff] }
  0x4f   : > { %v1967_v59 = vpack.c.bf16 %v980_v57, %v978_v7  ;;  %v1969_v0 = vpack.c.bf16 %v979_v61, %v977_v60 }
  0x50   : > { %1964 = vmatprep.subr.bf16.mxu0 %v1963_v54 }
  0x51   : > { %1966 = vmatpush1.bf16.msra.mxu0 %v1965_v58 }
  0x52   : > { %1968 = vmatprep.subr.bf16.mxu0 %v1967_v59 }
  0x55   : > { %1970 = vmatpush1.bf16.msra.mxu0 %v1969_v0 }
  0x56   : > { %1972 = vmatprep.subr.bf16.mxu0 %v1971_v1 }
  0x59   : > { %1974 = vmatpush1.bf16.msra.mxu0 %v1973_v6 }
  0x5a   : > { %1976 = vmatprep.subr.bf16.mxu0 %v1975_v8 }
  0x5d   : > { %1978 = vmatpush1.bf16.msra.mxu0 %v1977_v14 }
  0x5e   : > { %1980 = vmatprep.subr.bf16.mxu0 %v1979_v15 }
  0x61   : > { %1982 = vmatpush1.bf16.msra.mxu0 %v1981_v21 }
  0x62   : > { %1984 = vmatprep.subr.bf16.mxu0 %v1983_v22 }
  0x65   : > { %1986 = vmatpush1.bf16.msra.mxu0 %v1985_v28 }
  0xe4   : > { %v541_v31 = vpop.f32.mrb[0].mxu0 }
  0xe5   : > { %v542_v32 = vadd.f32 %v541_v31, %v2683_v29  ;;  %v543_v33 = vpop.f32.mrb[1].mxu0 }
  0xe6   : > { %v544_v34 = vadd.f32 %v543_v33, %v2686_v30 }
  0xe7   : > { %v636_v37 = vmax.f32 %v542_v32, 0.0 }
  0xe8   : > { %v547_v35 = vpop.f32.mrb[2].mxu0  ;;  %v637_v36 = vmax.f32 %v544_v34, 0.0 }
  0xe9   : > { %v548_v38 = vadd.f32 %v547_v35, %v2683_v29  ;;  %v549_v39 = vpop.f32.mrb[3].mxu0 }
  0xea   : > { %v550_v40 = vadd.f32 %v549_v39, %v2686_v30  ;;  %808 = vmatprep.mubr.f32.mxu1 %v637_v36 }
  0xeb   : > { %809 = vmatmul.mubr.f32.vlgmr.msra.gmra.mrb[0].mxu1 %v636_v37  ;;  %v638_v43 = vmax.f32 %v548_v38, 0.0 }
  0xec   : > { %v639_v41 = vmax.f32 %v550_v40, 0.0  ;;  %v553_v42 = vpop.f32.mrb[4].mxu0 }
  0xed   : > { %v554_v44 = vadd.f32 %v553_v42, %v2683_v29  ;;  %v555_v45 = vpop.f32.mrb[5].mxu0 }
  0xee   : > { %v556_v46 = vadd.f32 %v555_v45, %v2686_v30  ;;  %814 = vmatprep.mubr.f32.mxu1 %v639_v41 }
  0xef   : > { %815 = vmatmul.mubr.f32.gmra.mrb[2].mxu1 %v638_v43  ;;  %v640_v49 = vmax.f32 %v554_v44, 0.0 }
  0xf0   : > { %v641_v47 = vmax.f32 %v556_v46, 0.0  ;;  %v559_v48 = vpop.f32.mrb[6].mxu0 }
  0xf1   : > { %v560_v50 = vadd.f32 %v559_v48, %v2683_v29  ;;  %v561_v51 = vpop.f32.mrb[7].mxu0 }
  0xf2   : > { %v562_v52 = vadd.f32 %v561_v51, %v2686_v30  ;;  %820 = vmatprep.mubr.f32.mxu1 %v641_v47 }
  0xf3   : > { %821 = vmatmul.mubr.f32.gmra.mrb[4].mxu1 %v640_v49  ;;  %v642_v55 = vmax.f32 %v560_v50, 0.0 }
  0xf4   : > { %v643_v53 = vmax.f32 %v562_v52, 0.0  ;;  %v565_v54 = vpop.f32.mrb[8].mxu0 }
  0xf5   : > { %v566_v56 = vadd.f32 %v565_v54, %v2683_v29  ;;  %v567_v7 = vpop.f32.mrb[9].mxu0 }
  0xf6   : > { %v568_v57 = vadd.f32 %v567_v7, %v2686_v30  ;;  %826 = vmatprep.mubr.f32.mxu1 %v643_v53 }
  0xf7   : > { %827 = vmatmul.mubr.f32.gmra.mrb[6].mxu1 %v642_v55  ;;  %v644_v60 = vmax.f32 %v566_v56, 0.0 }
  0xf8   : > { %v645_v58 = vmax.f32 %v568_v57, 0.0  ;;  %v571_v59 = vpop.f32.mrb[10].mxu0 }
  0xf9   : > { %v572_v61 = vadd.f32 %v571_v59, %v2683_v29  ;;  %v573_v62 = vpop.f32.mrb[11].mxu0 }
  0xfa   : > { %v574_v63 = vadd.f32 %v573_v62, %v2686_v30  ;;  %832 = vmatprep.mubr.f32.mxu1 %v645_v58 }
  0xfb   : > { %833 = vmatmul.mubr.f32.gmra.mrb[8].mxu1 %v644_v60  ;;  %v646_v2 = vmax.f32 %v572_v61, 0.0 }
  0xfc   : > { %v647_v0 = vmax.f32 %v574_v63, 0.0  ;;  %v577_v1 = vpop.f32.mrb[12].mxu0 }
  0xfd   : > { %v578_v3 = vadd.f32 %v577_v1, %v2683_v29  ;;  %v579_v4 = vpop.f32.mrb[13].mxu0 }
  0xfe   : > { %v580_v5 = vadd.f32 %v579_v4, %v2686_v30  ;;  %838 = vmatprep.mubr.f32.mxu1 %v647_v0 }
  0xff   : > { %839 = vmatmul.mubr.f32.gmra.mrb[10].mxu1 %v646_v2  ;;  %v648_v9 = vmax.f32 %v578_v3, 0.0  ;;  %v998_v2 = vld [vmem:[%s3247_s5 + $0x1e8] sm:$0xff]  ;;  %v1000_v3 = vld [vmem:[%s3247_s5 + $0x1f8] sm:$0xff] }
 0x100   : > { %v649_v6 = vmax.f32 %v580_v5, 0.0  ;;  %v583_v8 = vpop.f32.mrb[14].mxu0  ;;  %v1987_v4 = vpack.c.bf16 %v1000_v3, %v998_v2  ;;  %v1242_v3 = vld [vmem:[%s3249_s7 + $0x120] sm:$0xff] }
 0x101   : > { %v584_v10 = vadd.f32 %v583_v8, %v2683_v29  ;;  %v585_v11 = vpop.f32.mrb[15].mxu0  ;;  %v1209_v8 = vld [vmem:[%s3249_s7 + $0x18] sm:$0xff] }
 0x102   : > { %v586_v12 = vadd.f32 %v585_v11, %v2686_v30  ;;  %844 = vmatprep.mubr.f32.mxu1 %v649_v6  ;;  %1988 = vmatprep.subr.bf16.mxu0 %v1987_v4  ;;  %v1207_v6 = vld [vmem:[%s3249_s7 + $0x8] sm:$0xff]  ;;  %v1208_v11 = vld [vmem:[%s3249_s7 + $0x10] sm:$0xff] }
 0x103   : > { %845 = vmatmul.mubr.f32.gmra.mrb[12].mxu1 %v648_v9  ;;  %v650_v15 = vmax.f32 %v584_v10, 0.0  ;;  %v1206_v9 = vld [vmem:[%s3249_s7] sm:$0xff]  ;;  %v1991_v10 = vpack.c.bf16 %v1209_v8, %v1207_v6  ;;  %v1244_v4 = vld [vmem:[%s3249_s7 + $0x130] sm:$0xff] }
 0x104   : > { %v651_v13 = vmax.f32 %v586_v12, 0.0  ;;  %v589_v14 = vpop.f32.mrb[16].mxu0  ;;  %v1211_v12 = vld [vmem:[%s3249_s7 + $0x28] sm:$0xff]  ;;  %v1246_v8 = vld [vmem:[%s3249_s7 + $0x140] sm:$0xff] }
 0x105   : > { %v590_v16 = vadd.f32 %v589_v14, %v2683_v29  ;;  %v591_v17 = vpop.f32.mrb[17].mxu0  ;;  %v1993_v14 = vpack.c.bf16 %v1208_v11, %v1206_v9  ;;  %1992 = vmatprep.subr.bf16.mxu1 %v1991_v10  ;;  %v1248_v9 = vld [vmem:[%s3249_s7 + $0x150] sm:$0xff]  ;;  %v1251_v10 = vld [vmem:[%s3249_s7 + $0x168] sm:$0xff]  ;;  %v1253_v11 = vld [vmem:[%s3249_s7 + $0x178] sm:$0xff] }
 0x106   : > { %v592_v18 = vadd.f32 %v591_v17, %v2686_v30  ;;  %850 = vmatprep.mubr.f32.mxu1 %v651_v13  ;;  %v1213_v13 = vld [vmem:[%s3249_s7 + $0x38] sm:$0xff]  ;;  %v1212_v17 = vld [vmem:[%s3249_s7 + $0x30] sm:$0xff] }
 0x107   : > { %851 = vmatmul.mubr.f32.gmra.mrb[14].mxu1 %v650_v15  ;;  %v652_v21 = vmax.f32 %v590_v16, 0.0  ;;  %v1995_v15 = vpack.c.bf16 %v1213_v13, %v1211_v12  ;;  %v1210_v16 = vld [vmem:[%s3249_s7 + $0x20] sm:$0xff]  ;;  %v2033_v12 = vpack.c.bf16 %v1248_v9, %v1246_v8  ;;  %v2035_v13 = vpack.c.bf16 %v1253_v11, %v1251_v10 }
 0x108   : > { %v653_v19 = vmax.f32 %v592_v18, 0.0  ;;  %v595_v20 = vpop.f32.mrb[18].mxu0  ;;  %v1215_v18 = vld [vmem:[%s3249_s7 + $0x48] sm:$0xff]  ;;  %1994 = vmatpush1.bf16.msra.mxu1 %v1993_v14  ;;  %v1250_v14 = vld [vmem:[%s3249_s7 + $0x160] sm:$0xff] }
 0x109   : > { %v596_v22 = vadd.f32 %v595_v20, %v2683_v29  ;;  %v597_v23 = vpop.f32.mrb[19].mxu0  ;;  %v1997_v20 = vpack.c.bf16 %v1212_v17, %v1210_v16  ;;  %1996 = vmatprep.subr.bf16.mxu1 %v1995_v15  ;;  %v1252_v15 = vld [vmem:[%s3249_s7 + $0x170] sm:$0xff]  ;;  %v1255_v16 = vld [vmem:[%s3249_s7 + $0x188] sm:$0xff]  ;;  %v1257_v17 = vld [vmem:[%s3249_s7 + $0x198] sm:$0xff] }
 0x10a   : > { %v598_v24 = vadd.f32 %v597_v23, %v2686_v30  ;;  %856 = vmatprep.mubr.f32.mxu1 %v653_v19  ;;  %v1217_v19 = vld [vmem:[%s3249_s7 + $0x58] sm:$0xff]  ;;  %v1216_v23 = vld [vmem:[%s3249_s7 + $0x50] sm:$0xff] }
 0x10b   : > { %857 = vmatmul.mubr.f32.gmra.mrb[16].mxu1 %v652_v21  ;;  %v654_v31 = vmax.f32 %v596_v22, 0.0  ;;  %v1999_v21 = vpack.c.bf16 %v1217_v19, %v1215_v18  ;;  %v1214_v22 = vld [vmem:[%s3249_s7 + $0x40] sm:$0xff]  ;;  %v2037_v18 = vpack.c.bf16 %v1252_v15, %v1250_v14  ;;  %v2039_v19 = vpack.c.bf16 %v1257_v17, %v1255_v16 }
 0x10c   : > { %v655_v26 = vmax.f32 %v598_v24, 0.0  ;;  %v601_v28 = vpop.f32.mrb[20].mxu0  ;;  %v1219_v24 = vld [vmem:[%s3249_s7 + $0x68] sm:$0xff]  ;;  %1998 = vmatpush1.bf16.msra.mxu1 %v1997_v20  ;;  %v1254_v20 = vld [vmem:[%s3249_s7 + $0x180] sm:$0xff] }
 0x10d   : > { %v602_v32 = vadd.f32 %v601_v28, %v2683_v29  ;;  %v603_v33 = vpop.f32.mrb[21].mxu0  ;;  %v2001_v28 = vpack.c.bf16 %v1216_v23, %v1214_v22  ;;  %2000 = vmatprep.subr.bf16.mxu1 %v1999_v21  ;;  %v1256_v21 = vld [vmem:[%s3249_s7 + $0x190] sm:$0xff]  ;;  %v1259_v22 = vld [vmem:[%s3249_s7 + $0x1a8] sm:$0xff]  ;;  %v1261_v23 = vld [vmem:[%s3249_s7 + $0x1b8] sm:$0xff] }
 0x10e   : > { %v604_v34 = vadd.f32 %v603_v33, %v2686_v30  ;;  %862 = vmatprep.mubr.f32.mxu1 %v655_v26  ;;  %v1221_v26 = vld [vmem:[%s3249_s7 + $0x78] sm:$0xff]  ;;  %v1220_v33 = vld [vmem:[%s3249_s7 + $0x70] sm:$0xff] }
 0x10f   : > { %863 = vmatmul.mubr.f32.gmra.mrb[18].mxu1 %v654_v31  ;;  %v656_v37 = vmax.f32 %v602_v32, 0.0  ;;  %v2003_v31 = vpack.c.bf16 %v1221_v26, %v1219_v24  ;;  %v1218_v32 = vld [vmem:[%s3249_s7 + $0x60] sm:$0xff]  ;;  %v2041_v24 = vpack.c.bf16 %v1256_v21, %v1254_v20  ;;  %v2043_v26 = vpack.c.bf16 %v1261_v23, %v1259_v22 }
 0x110   : > { %v657_v35 = vmax.f32 %v604_v34, 0.0  ;;  %v607_v36 = vpop.f32.mrb[22].mxu0  ;;  %v1223_v34 = vld [vmem:[%s3249_s7 + $0x88] sm:$0xff]  ;;  %2002 = vmatpush1.bf16.msra.mxu1 %v2001_v28  ;;  %v1258_v28 = vld [vmem:[%s3249_s7 + $0x1a0] sm:$0xff] }
 0x111   : > { %v608_v38 = vadd.f32 %v607_v36, %v2683_v29  ;;  %v609_v39 = vpop.f32.mrb[23].mxu0  ;;  %v2005_v36 = vpack.c.bf16 %v1220_v33, %v1218_v32  ;;  %2004 = vmatprep.subr.bf16.mxu1 %v2003_v31  ;;  %v1260_v31 = vld [vmem:[%s3249_s7 + $0x1b0] sm:$0xff]  ;;  %v1263_v32 = vld [vmem:[%s3249_s7 + $0x1c8] sm:$0xff]  ;;  %v1265_v33 = vld [vmem:[%s3249_s7 + $0x1d8] sm:$0xff] }
 0x112   : > { %v610_v40 = vadd.f32 %v609_v39, %v2686_v30  ;;  %868 = vmatprep.mubr.f32.mxu1 %v657_v35  ;;  %v1225_v35 = vld [vmem:[%s3249_s7 + $0x98] sm:$0xff]  ;;  %v1224_v39 = vld [vmem:[%s3249_s7 + $0x90] sm:$0xff] }
 0x113   : > { %869 = vmatmul.mubr.f32.gmra.mrb[20].mxu1 %v656_v37  ;;  %v658_v43 = vmax.f32 %v608_v38, 0.0  ;;  %v2007_v37 = vpack.c.bf16 %v1225_v35, %v1223_v34  ;;  %v1222_v38 = vld [vmem:[%s3249_s7 + $0x80] sm:$0xff]  ;;  %v2045_v34 = vpack.c.bf16 %v1260_v31, %v1258_v28  ;;  %v2047_v35 = vpack.c.bf16 %v1265_v33, %v1263_v32 }
 0x114   : > { %v659_v41 = vmax.f32 %v610_v40, 0.0  ;;  %v613_v42 = vpop.f32.mrb[24].mxu0  ;;  %v1227_v40 = vld [vmem:[%s3249_s7 + $0xa8] sm:$0xff]  ;;  %2006 = vmatpush1.bf16.msra.mxu1 %v2005_v36  ;;  %v1262_v36 = vld [vmem:[%s3249_s7 + $0x1c0] sm:$0xff] }
 0x115   : > { %v614_v44 = vadd.f32 %v613_v42, %v2683_v29  ;;  %v615_v45 = vpop.f32.mrb[25].mxu0  ;;  %v2009_v42 = vpack.c.bf16 %v1224_v39, %v1222_v38  ;;  %2008 = vmatprep.subr.bf16.mxu1 %v2007_v37  ;;  %v1264_v37 = vld [vmem:[%s3249_s7 + $0x1d0] sm:$0xff]  ;;  %v732_v38 = vld [vmem:[%s3246_s4] sm:$0x3] }
 0x116   : > { %v616_v46 = vadd.f32 %v615_v45, %v2686_v30  ;;  %874 = vmatprep.mubr.f32.mxu1 %v659_v41  ;;  %v1229_v41 = vld [vmem:[%s3249_s7 + $0xb8] sm:$0xff]  ;;  %v1228_v45 = vld [vmem:[%s3249_s7 + $0xb0] sm:$0xff]  ;;  %v2049_v39 = vpack.c.bf16 %v1264_v37, %v1262_v36 }
 0x117   : > { %875 = vmatmul.mubr.f32.gmra.mrb[22].mxu1 %v658_v43  ;;  %v660_v49 = vmax.f32 %v614_v44, 0.0  ;;  %v2011_v43 = vpack.c.bf16 %v1229_v41, %v1227_v40  ;;  %v1226_v44 = vld [vmem:[%s3249_s7 + $0xa0] sm:$0xff]  ;;  %v2916_v40 = vrot.slane %v732_v38, %v2675_v25  ;;  %v2919_v41 = vrot.slane %v732_v38, %v2680_v27 }
 0x118   : > { %v661_v47 = vmax.f32 %v616_v46, 0.0  ;;  %v619_v48 = vpop.f32.mrb[26].mxu0  ;;  %v1231_v46 = vld [vmem:[%s3249_s7 + $0xc8] sm:$0xff]  ;;  %2010 = vmatpush1.bf16.msra.mxu1 %v2009_v42 }
 0x119   : > { %v620_v50 = vadd.f32 %v619_v48, %v2683_v29  ;;  %v621_v51 = vpop.f32.mrb[27].mxu0  ;;  %v2013_v48 = vpack.c.bf16 %v1228_v45, %v1226_v44  ;;  %2012 = vmatprep.subr.bf16.mxu1 %v2011_v43 }
 0x11a   : > { %v622_v52 = vadd.f32 %v621_v51, %v2686_v30  ;;  %880 = vmatprep.mubr.f32.mxu1 %v661_v47  ;;  %v1233_v47 = vld [vmem:[%s3249_s7 + $0xd8] sm:$0xff]  ;;  %v1232_v51 = vld [vmem:[%s3249_s7 + $0xd0] sm:$0xff] }
 0x11b   : > { %881 = vmatmul.mubr.f32.gmra.mrb[24].mxu1 %v660_v49  ;;  %v662_v55 = vmax.f32 %v620_v50, 0.0  ;;  %v2015_v49 = vpack.c.bf16 %v1233_v47, %v1231_v46  ;;  %v1230_v50 = vld [vmem:[%s3249_s7 + $0xc0] sm:$0xff] }
 0x11c   : > { %v663_v53 = vmax.f32 %v622_v52, 0.0  ;;  %v625_v54 = vpop.f32.mrb[28].mxu0  ;;  %v1235_v52 = vld [vmem:[%s3249_s7 + $0xe8] sm:$0xff]  ;;  %2014 = vmatpush1.bf16.msra.mxu1 %v2013_v48 }
 0x11d   : > { %v626_v56 = vadd.f32 %v625_v54, %v2683_v29  ;;  %v627_v7 = vpop.f32.mrb[29].mxu0  ;;  %v2017_v54 = vpack.c.bf16 %v1232_v51, %v1230_v50  ;;  %2016 = vmatprep.subr.bf16.mxu1 %v2015_v49 }
 0x11e   : > { %v628_v57 = vadd.f32 %v627_v7, %v2686_v30  ;;  %886 = vmatprep.mubr.f32.mxu1 %v663_v53  ;;  %v1237_v53 = vld [vmem:[%s3249_s7 + $0xf8] sm:$0xff]  ;;  %v1236_v7 = vld [vmem:[%s3249_s7 + $0xf0] sm:$0xff] }
 0x11f   : > { %887 = vmatmul.mubr.f32.gmra.mrb[26].mxu1 %v662_v55  ;;  %v664_v60 = vmax.f32 %v626_v56, 0.0  ;;  %v2019_v55 = vpack.c.bf16 %v1237_v53, %v1235_v52  ;;  %v1234_v56 = vld [vmem:[%s3249_s7 + $0xe0] sm:$0xff] }
 0x120   : > { %v665_v58 = vmax.f32 %v628_v57, 0.0  ;;  %v631_v59 = vpop.f32.mrb[30].mxu0  ;;  %v1239_v57 = vld [vmem:[%s3249_s7 + $0x108] sm:$0xff]  ;;  %2018 = vmatpush1.bf16.msra.mxu1 %v2017_v54 }
 0x121   : > { %v632_v61 = vadd.f32 %v631_v59, %v2683_v29  ;;  %v633_v62 = vpop.f32.mrb[31].mxu0  ;;  %v997_v29 = vld [vmem:[%s3247_s5 + $0x1e0] sm:$0xff]  ;;  %v2021_v59 = vpack.c.bf16 %v1236_v7, %v1234_v56  ;;  %2020 = vmatprep.subr.bf16.mxu1 %v2019_v55 }
 0x122   : > { %v634_v63 = vadd.f32 %v633_v62, %v2686_v30  ;;  %892 = vmatprep.mubr.f32.mxu1 %v665_v58  ;;  %v999_v30 = vld [vmem:[%s3247_s5 + $0x1f0] sm:$0xff]  ;;  %v1241_v58 = vld [vmem:[%s3249_s7 + $0x118] sm:$0xff] }
 0x123   : > { %893 = vmatmul.mubr.f32.gmra.mrb[28].mxu1 %v664_v60  ;;  %v666_v1 = vmax.f32 %v632_v61, 0.0  ;;  %v1989_v5 = vpack.c.bf16 %v999_v30, %v997_v29  ;;  %v2023_v60 = vpack.c.bf16 %v1241_v58, %v1239_v57  ;;  %v1238_v61 = vld [vmem:[%s3249_s7 + $0x100] sm:$0xff]  ;;  %v1240_v62 = vld [vmem:[%s3249_s7 + $0x110] sm:$0xff]  ;;  %v1247_v29 = vld [vmem:[%s3249_s7 + $0x148] sm:$0xff] }
 0x124   : > { %v667_v0 = vmax.f32 %v634_v63, 0.0  ;;  %v1243_v63 = vld [vmem:[%s3249_s7 + $0x128] sm:$0xff]  ;;  %2022 = vmatpush1.bf16.msra.mxu1 %v2021_v59  ;;  %v1249_v30 = vld [vmem:[%s3249_s7 + $0x158] sm:$0xff] }
 0x125   : > { %1990 = vmatpush1.bf16.msra.mxu0 %v1989_v5  ;;  %2024 = vmatprep.subr.bf16.mxu1 %v2023_v60  ;;  %v2029_v5 = vpack.c.bf16 %v1244_v4, %v1242_v3  ;;  %v2031_v6 = vpack.c.bf16 %v1249_v30, %v1247_v29 }
 0x126   : > { %898 = vmatprep.mubr.f32.mxu1 %v667_v0  ;;  %v1245_v0 = vld [vmem:[%s3249_s7 + $0x138] sm:$0xff] }
 0x127   : > { %899 = vmatmul.mubr.f32.gmra.mrb[30].mxu1 %v666_v1  ;;  %v2025_v1 = vpack.c.bf16 %v1240_v62, %v1238_v61  ;;  %v2027_v2 = vpack.c.bf16 %v1245_v0, %v1243_v63 }
 0x129   : > { %2026 = vmatpush1.bf16.msra.mxu1 %v2025_v1 }
 0x12a   : > { %2028 = vmatprep.subr.bf16.mxu1 %v2027_v2 }
 0x12d   : > { %2030 = vmatpush1.bf16.msra.mxu1 %v2029_v5 }
 0x12e   : > { %2032 = vmatprep.subr.bf16.mxu1 %v2031_v6 }
 0x131   : > { %2034 = vmatpush1.bf16.msra.mxu1 %v2033_v12 }
 0x132   : > { %2036 = vmatprep.subr.bf16.mxu1 %v2035_v13 }
 0x135   : > { %2038 = vmatpush1.bf16.msra.mxu1 %v2037_v18 }
 0x136   : > { %2040 = vmatprep.subr.bf16.mxu1 %v2039_v19 }
 0x139   : > { %2042 = vmatpush1.bf16.msra.mxu1 %v2041_v24 }
 0x13a   : > { %2044 = vmatprep.subr.bf16.mxu1 %v2043_v26 }
 0x13d   : > { %2046 = vmatpush1.bf16.msra.mxu1 %v2045_v34 }
 0x13e   : > { %2048 = vmatprep.subr.bf16.mxu1 %v2047_v35 }
 0x141   : > { %2050 = vmatpush1.bf16.msra.mxu1 %v2049_v39 }
 0x1be   : > { %v810_v42 = vpop.f32.mrb[0].mxu1 }
 0x1bf   : > { %v811_v43 = vadd.f32 %v810_v42, %v2916_v40  ;;  %v812_v44 = vpop.f32.mrb[1].mxu1 }
 0x1c0   : > { %v813_v45 = vadd.f32 %v812_v44, %v2919_v41 }
 0x1c1   : > { %v905_v48 = vmax.f32 %v811_v43, 0.0 }
 0x1c2   : > { %v906_v46 = vmax.f32 %v813_v45, 0.0  ;;  %v816_v47 = vpop.f32.mrb[2].mxu1 }
 0x1c3   : > { %v817_v49 = vadd.f32 %v816_v47, %v2916_v40  ;;  %v818_v50 = vpop.f32.mrb[3].mxu1 }
 0x1c4   : > { %v819_v51 = vadd.f32 %v818_v50, %v2919_v41  ;;  %1077 = vmatprep.mubr.f32.mxu0 %v906_v46 }
 0x1c5   : > { %1078 = vmatmul.mubr.f32.vlgmr.msra.gmra.mrb[32].mxu0 %v905_v48  ;;  %v907_v54 = vmax.f32 %v817_v49, 0.0 }
 0x1c6   : > { %v908_v52 = vmax.f32 %v819_v51, 0.0  ;;  %v822_v53 = vpop.f32.mrb[4].mxu1 }
 0x1c7   : > { %v823_v55 = vadd.f32 %v822_v53, %v2916_v40  ;;  %v824_v56 = vpop.f32.mrb[5].mxu1 }
 0x1c8   : > { %v825_v7 = vadd.f32 %v824_v56, %v2919_v41  ;;  %1083 = vmatprep.mubr.f32.mxu0 %v908_v52 }
 0x1c9   : > { %1084 = vmatmul.mubr.f32.gmra.mrb[34].mxu0 %v907_v54  ;;  %v909_v59 = vmax.f32 %v823_v55, 0.0 }
 0x1ca   : > { %v910_v57 = vmax.f32 %v825_v7, 0.0  ;;  %v828_v58 = vpop.f32.mrb[6].mxu1 }
 0x1cb   : > { %v829_v60 = vadd.f32 %v828_v58, %v2916_v40  ;;  %v830_v61 = vpop.f32.mrb[7].mxu1 }
 0x1cc   : > { %v831_v62 = vadd.f32 %v830_v61, %v2919_v41  ;;  %1089 = vmatprep.mubr.f32.mxu0 %v910_v57 }
 0x1cd   : > { %1090 = vmatmul.mubr.f32.gmra.mrb[36].mxu0 %v909_v59  ;;  %v911_v1 = vmax.f32 %v829_v60, 0.0 }
 0x1ce   : > { %v912_v63 = vmax.f32 %v831_v62, 0.0  ;;  %v834_v0 = vpop.f32.mrb[8].mxu1 }
 0x1cf   : > { %v835_v2 = vadd.f32 %v834_v0, %v2916_v40  ;;  %v836_v3 = vpop.f32.mrb[9].mxu1 }
 0x1d0   : > { %v837_v4 = vadd.f32 %v836_v3, %v2919_v41  ;;  %1095 = vmatprep.mubr.f32.mxu0 %v912_v63 }
 0x1d1   : > { %1096 = vmatmul.mubr.f32.gmra.mrb[38].mxu0 %v911_v1  ;;  %v913_v5 = vmax.f32 %v835_v2, 0.0 }
 0x1d2   : > { %v914_v29 = vmax.f32 %v837_v4, 0.0  ;;  %v840_v30 = vpop.f32.mrb[10].mxu1 }
 0x1d3   : > { %v841_v6 = vadd.f32 %v840_v30, %v2916_v40  ;;  %v842_v8 = vpop.f32.mrb[11].mxu1 }
 0x1d4   : > { %v843_v9 = vadd.f32 %v842_v8, %v2919_v41  ;;  %1101 = vmatprep.mubr.f32.mxu0 %v914_v29 }
 0x1d5   : > { %1102 = vmatmul.mubr.f32.gmra.mrb[40].mxu0 %v913_v5  ;;  %v915_v12 = vmax.f32 %v841_v6, 0.0 }
 0x1d6   : > { %v916_v10 = vmax.f32 %v843_v9, 0.0  ;;  %v846_v11 = vpop.f32.mrb[12].mxu1 }
 0x1d7   : > { %v847_v13 = vadd.f32 %v846_v11, %v2916_v40  ;;  %v848_v14 = vpop.f32.mrb[13].mxu1 }
 0x1d8   : > { %v849_v15 = vadd.f32 %v848_v14, %v2919_v41  ;;  %1107 = vmatprep.mubr.f32.mxu0 %v916_v10 }
 0x1d9   : > { %1108 = vmatmul.mubr.f32.gmra.mrb[42].mxu0 %v915_v12  ;;  %v917_v18 = vmax.f32 %v847_v13, 0.0  ;;  %v1267_v12 = vld [vmem:[%s3249_s7 + $0x1e8] sm:$0xff]  ;;  %v1269_v13 = vld [vmem:[%s3249_s7 + $0x1f8] sm:$0xff] }
 0x1da   : > { %v918_v16 = vmax.f32 %v849_v15, 0.0  ;;  %v852_v17 = vpop.f32.mrb[14].mxu1  ;;  %v2051_v14 = vpack.c.bf16 %v1269_v13, %v1267_v12 }
 0x1db   : > { %v853_v19 = vadd.f32 %v852_v17, %v2916_v40  ;;  %v854_v20 = vpop.f32.mrb[15].mxu1  ;;  %v1492_v17 = vld [vmem:[%s3251_s9 + $0x88] sm:$0xff] }
 0x1dc   : > { %v855_v21 = vadd.f32 %v854_v20, %v2919_v41  ;;  %1113 = vmatprep.mubr.f32.mxu0 %v918_v16  ;;  %2052 = vmatprep.subr.bf16.mxu1 %v2051_v14  ;;  %v1491_v16 = vld [vmem:[%s3251_s9 + $0x80] sm:$0xff]  ;;  %v1476_v20 = vld [vmem:[%s3251_s9 + $0x8] sm:$0xff] }
 0x1dd   : > { %1114 = vmatmul.mubr.f32.gmra.mrb[44].mxu0 %v917_v18  ;;  %v919_v24 = vmax.f32 %v853_v19, 0.0  ;;  %v1475_v18 = vld [vmem:[%s3251_s9] sm:$0xff]  ;;  %v2055_v19 = vpack.c.bf16 %v1492_v17, %v1491_v16 }
 0x1de   : > { %v920_v22 = vmax.f32 %v855_v21, 0.0  ;;  %v858_v23 = vpop.f32.mrb[16].mxu1  ;;  %v1493_v21 = vld [vmem:[%s3251_s9 + $0x90] sm:$0xff] }
 0x1df   : > { %v859_v26 = vadd.f32 %v858_v23, %v2916_v40  ;;  %v860_v28 = vpop.f32.mrb[17].mxu1  ;;  %v2983_v23 = vpack.c.bf16 %v1476_v20, %v1475_v18  ;;  %2056 = vmatprep.subr.bf16.mxu0 %v2055_v19 }
 0x1e0   : > { %v861_v31 = vadd.f32 %v860_v28, %v2919_v41  ;;  %1119 = vmatprep.mubr.f32.mxu0 %v920_v22  ;;  %v1494_v22 = vld [vmem:[%s3251_s9 + $0x98] sm:$0xff] }
 0x1e1   : > { %1120 = vmatmul.mubr.f32.gmra.mrb[46].mxu0 %v919_v24  ;;  %v921_v34 = vmax.f32 %v859_v26, 0.0  ;;  %v2985_v24 = vpack.c.bf16 %v1494_v22, %v1493_v21  ;;  %v1477_v26 = vld [vmem:[%s3251_s9 + $0x10] sm:$0xff]  ;;  %v1478_v28 = vld [vmem:[%s3251_s9 + $0x18] sm:$0xff] }
 0x1e2   : > { %v922_v32 = vmax.f32 %v861_v31, 0.0  ;;  %v864_v33 = vpop.f32.mrb[18].mxu1  ;;  %v1495_v31 = vld [vmem:[%s3251_s9 + $0xa0] sm:$0xff]  ;;  %2058 = vmatpush3.bf16.msra.mxu0 %v2983_v23 }
 0x1e3   : > { %v865_v35 = vadd.f32 %v864_v33, %v2916_v40  ;;  %v866_v36 = vpop.f32.mrb[19].mxu1  ;;  %v3000_v33 = vpack.c.bf16 %v1478_v28, %v1477_v26  ;;  %2060 = vmatprep.subr.bf16.mxu0 %v2985_v24 }
 0x1e4   : > { %v867_v37 = vadd.f32 %v866_v36, %v2919_v41  ;;  %1125 = vmatprep.mubr.f32.mxu0 %v922_v32  ;;  %v1496_v32 = vld [vmem:[%s3251_s9 + $0xa8] sm:$0xff] }
 0x1e5   : > { %1126 = vmatmul.mubr.f32.gmra.mrb[48].mxu0 %v921_v34  ;;  %v923_v42 = vmax.f32 %v865_v35, 0.0  ;;  %v3003_v34 = vpack.c.bf16 %v1496_v32, %v1495_v31  ;;  %v1479_v35 = vld [vmem:[%s3251_s9 + $0x20] sm:$0xff]  ;;  %v1480_v36 = vld [vmem:[%s3251_s9 + $0x28] sm:$0xff] }
 0x1e6   : > { %v924_v38 = vmax.f32 %v867_v37, 0.0  ;;  %v870_v39 = vpop.f32.mrb[20].mxu1  ;;  %v1497_v37 = vld [vmem:[%s3251_s9 + $0xb0] sm:$0xff]  ;;  %2062 = vmatpush3.bf16.msra.mxu0 %v3000_v33 }
 0x1e7   : > { %v871_v43 = vadd.f32 %v870_v39, %v2916_v40  ;;  %v872_v44 = vpop.f32.mrb[21].mxu1  ;;  %v3018_v39 = vpack.c.bf16 %v1480_v36, %v1479_v35  ;;  %2064 = vmatprep.subr.bf16.mxu0 %v3003_v34 }
 0x1e8   : > { %v873_v45 = vadd.f32 %v872_v44, %v2919_v41  ;;  %1131 = vmatprep.mubr.f32.mxu0 %v924_v38  ;;  %v1498_v38 = vld [vmem:[%s3251_s9 + $0xb8] sm:$0xff] }
 0x1e9   : > { %1132 = vmatmul.mubr.f32.gmra.mrb[50].mxu0 %v923_v42  ;;  %v925_v48 = vmax.f32 %v871_v43, 0.0  ;;  %v3021_v42 = vpack.c.bf16 %v1498_v38, %v1497_v37  ;;  %v1481_v43 = vld [vmem:[%s3251_s9 + $0x30] sm:$0xff]  ;;  %v1482_v44 = vld [vmem:[%s3251_s9 + $0x38] sm:$0xff] }
 0x1ea   : > { %v926_v46 = vmax.f32 %v873_v45, 0.0  ;;  %v876_v47 = vpop.f32.mrb[22].mxu1  ;;  %v1499_v45 = vld [vmem:[%s3251_s9 + $0xc0] sm:$0xff]  ;;  %2066 = vmatpush3.bf16.msra.mxu0 %v3018_v39 }
 0x1eb   : > { %v877_v49 = vadd.f32 %v876_v47, %v2916_v40  ;;  %v878_v50 = vpop.f32.mrb[23].mxu1  ;;  %v3036_v47 = vpack.c.bf16 %v1482_v44, %v1481_v43  ;;  %2068 = vmatprep.subr.bf16.mxu0 %v3021_v42 }
 0x1ec   : > { %v879_v51 = vadd.f32 %v878_v50, %v2919_v41  ;;  %1137 = vmatprep.mubr.f32.mxu0 %v926_v46  ;;  %v1500_v46 = vld [vmem:[%s3251_s9 + $0xc8] sm:$0xff] }
 0x1ed   : > { %1138 = vmatmul.mubr.f32.gmra.mrb[52].mxu0 %v925_v48  ;;  %v927_v54 = vmax.f32 %v877_v49, 0.0  ;;  %v3039_v48 = vpack.c.bf16 %v1500_v46, %v1499_v45  ;;  %v1483_v49 = vld [vmem:[%s3251_s9 + $0x40] sm:$0xff]  ;;  %v1484_v50 = vld [vmem:[%s3251_s9 + $0x48] sm:$0xff] }
 0x1ee   : > { %v928_v52 = vmax.f32 %v879_v51, 0.0  ;;  %v882_v53 = vpop.f32.mrb[24].mxu1  ;;  %v1501_v51 = vld [vmem:[%s3251_s9 + $0xd0] sm:$0xff]  ;;  %2070 = vmatpush3.bf16.msra.mxu0 %v3036_v47 }
 0x1ef   : > { %v883_v55 = vadd.f32 %v882_v53, %v2916_v40  ;;  %v884_v56 = vpop.f32.mrb[25].mxu1  ;;  %v3054_v53 = vpack.c.bf16 %v1484_v50, %v1483_v49  ;;  %2072 = vmatprep.subr.bf16.mxu0 %v3039_v48 }
 0x1f0   : > { %v885_v7 = vadd.f32 %v884_v56, %v2919_v41  ;;  %1143 = vmatprep.mubr.f32.mxu0 %v928_v52  ;;  %v1502_v52 = vld [vmem:[%s3251_s9 + $0xd8] sm:$0xff] }
 0x1f1   : > { %1144 = vmatmul.mubr.f32.gmra.mrb[54].mxu0 %v927_v54  ;;  %v929_v59 = vmax.f32 %v883_v55, 0.0  ;;  %v3057_v54 = vpack.c.bf16 %v1502_v52, %v1501_v51  ;;  %v1485_v55 = vld [vmem:[%s3251_s9 + $0x50] sm:$0xff]  ;;  %v1486_v56 = vld [vmem:[%s3251_s9 + $0x58] sm:$0xff] }
 0x1f2   : > { %v930_v57 = vmax.f32 %v885_v7, 0.0  ;;  %v888_v58 = vpop.f32.mrb[26].mxu1  ;;  %v1503_v7 = vld [vmem:[%s3251_s9 + $0xe0] sm:$0xff]  ;;  %2074 = vmatpush3.bf16.msra.mxu0 %v3054_v53 }
 0x1f3   : > { %v889_v60 = vadd.f32 %v888_v58, %v2916_v40  ;;  %v890_v61 = vpop.f32.mrb[27].mxu1  ;;  %v3072_v58 = vpack.c.bf16 %v1486_v56, %v1485_v55  ;;  %2076 = vmatprep.subr.bf16.mxu0 %v3057_v54 }
 0x1f4   : > { %v891_v62 = vadd.f32 %v890_v61, %v2919_v41  ;;  %1149 = vmatprep.mubr.f32.mxu0 %v930_v57  ;;  %v1504_v57 = vld [vmem:[%s3251_s9 + $0xe8] sm:$0xff] }
 0x1f5   : > { %1150 = vmatmul.mubr.f32.gmra.mrb[56].mxu0 %v929_v59  ;;  %v931_v1 = vmax.f32 %v889_v60, 0.0  ;;  %v3075_v59 = vpack.c.bf16 %v1504_v57, %v1503_v7  ;;  %v1487_v60 = vld [vmem:[%s3251_s9 + $0x60] sm:$0xff]  ;;  %v1488_v61 = vld [vmem:[%s3251_s9 + $0x68] sm:$0xff] }
 0x1f6   : > { %v932_v63 = vmax.f32 %v891_v62, 0.0  ;;  %v894_v0 = vpop.f32.mrb[28].mxu1  ;;  %2078 = vmatpush3.bf16.msra.mxu0 %v3072_v58  ;;  %v3084_v62 = vpack.c.bf16 %v1488_v61, %v1487_v60 }
 0x1f7   : > { %v895_v2 = vadd.f32 %v894_v0, %v2916_v40  ;;  %v896_v3 = vpop.f32.mrb[29].mxu1  ;;  %2080 = vmatprep.subr.bf16.mxu0 %v3075_v59 }
 0x1f8   : > { %v897_v4 = vadd.f32 %v896_v3, %v2919_v41  ;;  %1155 = vmatprep.mubr.f32.mxu0 %v932_v63  ;;  %v1001_v63 = vld [vmem:[%s3248_s6] sm:$0x3] }
 0x1f9   : > { %1156 = vmatmul.mubr.f32.gmra.mrb[58].mxu0 %v931_v1  ;;  %v933_v5 = vmax.f32 %v895_v2, 0.0  ;;  %v3092_v0 = vrot.slane %v1001_v63, %v2675_v25  ;;  %v3095_v1 = vrot.slane %v1001_v63, %v2680_v27 }
 0x1fa   : > { %v934_v29 = vmax.f32 %v897_v4, 0.0  ;;  %v900_v30 = vpop.f32.mrb[30].mxu1  ;;  %2082 = vmatpush3.bf16.msra.mxu0 %v3084_v62 }
 0x1fb   : > { %v901_v6 = vadd.f32 %v900_v30, %v2916_v40  ;;  %v902_v8 = vpop.f32.mrb[31].mxu1  ;;  %v1266_v40 = vld [vmem:[%s3249_s7 + $0x1e0] sm:$0xff] }
 0x1fc   : > { %v903_v9 = vadd.f32 %v902_v8, %v2919_v41  ;;  %1161 = vmatprep.mubr.f32.mxu0 %v934_v29  ;;  %v1268_v41 = vld [vmem:[%s3249_s7 + $0x1f0] sm:$0xff] }
 0x1fd   : > { %1162 = vmatmul.mubr.f32.gmra.mrb[60].mxu0 %v933_v5  ;;  %v935_v11 = vmax.f32 %v901_v6, 0.0  ;;  %v2053_v15 = vpack.c.bf16 %v1268_v41, %v1266_v40 }
 0x1fe   : > { %v936_v10 = vmax.f32 %v903_v9, 0.0 }
 0x1ff   : > { %2054 = vmatpush1.bf16.msra.mxu1 %v2053_v15 }
 0x200   : > { %1167 = vmatprep.mubr.f32.mxu0 %v936_v10  ;;  %2087 = vmatprep.subr.bf16.mxu1 %v2055_v19 }
 0x201   : > { %1168 = vmatmul.mubr.f32.gmra.mrb[62].mxu0 %v935_v11 }
 0x298   : > { %v1079_v2 = vpop.f32.mrb[32].mxu0 }
 0x299   : > { %v1080_v3 = vadd.f32 %v1079_v2, %v3092_v0  ;;  %v1081_v4 = vpop.f32.mrb[33].mxu0 }
 0x29a   : > { %v1082_v29 = vadd.f32 %v1081_v4, %v3095_v1 }
 0x29b   : > { %v1174_v6 = vmax.f32 %v1080_v3, 0.0 }
 0x29c   : > { %v1175_v30 = vmax.f32 %v1082_v29, 0.0  ;;  %v1085_v5 = vpop.f32.mrb[34].mxu0 }
 0x29d   : > { %v1086_v8 = vadd.f32 %v1085_v5, %v3092_v0  ;;  %v1087_v9 = vpop.f32.mrb[35].mxu0 }
 0x29e   : > { %v1088_v10 = vadd.f32 %v1087_v9, %v3095_v1  ;;  %1346 = vmatprep.mubr.f32.mxu1 %v1175_v30 }
 0x29f   : > { %1347 = vmatmul.mubr.f32.vlgmr.msra.gmra.mrb[32].mxu1 %v1174_v6  ;;  %v1176_v13 = vmax.f32 %v1086_v8, 0.0 }
 0x2a0   : > { %v1177_v11 = vmax.f32 %v1088_v10, 0.0  ;;  %v1091_v12 = vpop.f32.mrb[36].mxu0  ;;  %2095 = vmatpush3.bf16.msra.mxu1 %v2983_v23 }
 0x2a1   : > { %v1092_v14 = vadd.f32 %v1091_v12, %v3092_v0  ;;  %v1093_v40 = vpop.f32.mrb[37].mxu0  ;;  %2088 = vmatprep.subr.bf16.mxu1 %v2985_v24 }
 0x2a2   : > { %v1094_v41 = vadd.f32 %v1093_v40, %v3095_v1  ;;  %1352 = vmatprep.mubr.f32.mxu1 %v1177_v11 }
 0x2a3   : > { %1353 = vmatmul.mubr.f32.gmra.mrb[34].mxu1 %v1176_v13  ;;  %v1178_v17 = vmax.f32 %v1092_v14, 0.0 }
 0x2a4   : > { %v1179_v15 = vmax.f32 %v1094_v41, 0.0  ;;  %v1097_v16 = vpop.f32.mrb[38].mxu0  ;;  %2096 = vmatpush3.bf16.msra.mxu1 %v3000_v33 }
 0x2a5   : > { %v1098_v18 = vadd.f32 %v1097_v16, %v3092_v0  ;;  %v1099_v19 = vpop.f32.mrb[39].mxu0  ;;  %2089 = vmatprep.subr.bf16.mxu1 %v3003_v34 }
 0x2a6   : > { %v1100_v20 = vadd.f32 %v1099_v19, %v3095_v1  ;;  %1358 = vmatprep.mubr.f32.mxu1 %v1179_v15 }
 0x2a7   : > { %1359 = vmatmul.mubr.f32.gmra.mrb[36].mxu1 %v1178_v17  ;;  %v1180_v23 = vmax.f32 %v1098_v18, 0.0 }
 0x2a8   : > { %v1181_v21 = vmax.f32 %v1100_v20, 0.0  ;;  %v1103_v22 = vpop.f32.mrb[40].mxu0  ;;  %2097 = vmatpush3.bf16.msra.mxu1 %v3018_v39 }
 0x2a9   : > { %v1104_v24 = vadd.f32 %v1103_v22, %v3092_v0  ;;  %v1105_v26 = vpop.f32.mrb[41].mxu0  ;;  %2090 = vmatprep.subr.bf16.mxu1 %v3021_v42 }
 0x2aa   : > { %v1106_v28 = vadd.f32 %v1105_v26, %v3095_v1  ;;  %1364 = vmatprep.mubr.f32.mxu1 %v1181_v21 }
 0x2ab   : > { %1365 = vmatmul.mubr.f32.gmra.mrb[38].mxu1 %v1180_v23  ;;  %v1182_v33 = vmax.f32 %v1104_v24, 0.0 }
 0x2ac   : > { %v1183_v31 = vmax.f32 %v1106_v28, 0.0  ;;  %v1109_v32 = vpop.f32.mrb[42].mxu0  ;;  %2098 = vmatpush3.bf16.msra.mxu1 %v3036_v47 }
 0x2ad   : > { %v1110_v34 = vadd.f32 %v1109_v32, %v3092_v0  ;;  %v1111_v35 = vpop.f32.mrb[43].mxu0  ;;  %2091 = vmatprep.subr.bf16.mxu1 %v3039_v48 }
 0x2ae   : > { %v1112_v36 = vadd.f32 %v1111_v35, %v3095_v1  ;;  %1370 = vmatprep.mubr.f32.mxu1 %v1183_v31 }
 0x2af   : > { %1371 = vmatmul.mubr.f32.gmra.mrb[40].mxu1 %v1182_v33  ;;  %v1184_v39 = vmax.f32 %v1110_v34, 0.0 }
 0x2b0   : > { %v1185_v37 = vmax.f32 %v1112_v36, 0.0  ;;  %v1115_v38 = vpop.f32.mrb[44].mxu0  ;;  %2099 = vmatpush3.bf16.msra.mxu1 %v3054_v53 }
 0x2b1   : > { %v1116_v42 = vadd.f32 %v1115_v38, %v3092_v0  ;;  %v1117_v43 = vpop.f32.mrb[45].mxu0  ;;  %2092 = vmatprep.subr.bf16.mxu1 %v3057_v54 }
 0x2b2   : > { %v1118_v44 = vadd.f32 %v1117_v43, %v3095_v1  ;;  %1376 = vmatprep.mubr.f32.mxu1 %v1185_v37 }
 0x2b3   : > { %1377 = vmatmul.mubr.f32.gmra.mrb[42].mxu1 %v1184_v39  ;;  %v1186_v47 = vmax.f32 %v1116_v42, 0.0  ;;  %v1505_v39 = vld [vmem:[%s3251_s9 + $0xf0] sm:$0xff]  ;;  %v1506_v42 = vld [vmem:[%s3251_s9 + $0xf8] sm:$0xff] }
 0x2b4   : > { %v1187_v45 = vmax.f32 %v1118_v44, 0.0  ;;  %v1121_v46 = vpop.f32.mrb[46].mxu0  ;;  %2100 = vmatpush3.bf16.msra.mxu1 %v3072_v58  ;;  %v2083_v43 = vpack.c.bf16 %v1506_v42, %v1505_v39 }
 0x2b5   : > { %v1122_v48 = vadd.f32 %v1121_v46, %v3092_v0  ;;  %v1123_v49 = vpop.f32.mrb[47].mxu0  ;;  %2093 = vmatprep.subr.bf16.mxu1 %v3075_v59 }
 0x2b6   : > { %v1124_v50 = vadd.f32 %v1123_v49, %v3095_v1  ;;  %1382 = vmatprep.mubr.f32.mxu1 %v1187_v45  ;;  %2084 = vmatprep.subr.bf16.mxu0 %v2083_v43  ;;  %v1270_v45 = vld [vmem:[%s3250_s8] sm:$0x3] }
 0x2b7   : > { %1383 = vmatmul.mubr.f32.gmra.mrb[44].mxu1 %v1186_v47  ;;  %v1188_v53 = vmax.f32 %v1122_v48, 0.0  ;;  %v3158_v46 = vrot.slane %v1270_v45, %v2675_v25  ;;  %v3161_v47 = vrot.slane %v1270_v45, %v2680_v27 }
 0x2b8   : > { %v1189_v51 = vmax.f32 %v1124_v50, 0.0  ;;  %v1127_v52 = vpop.f32.mrb[48].mxu0  ;;  %2101 = vmatpush3.bf16.msra.mxu1 %v3084_v62 }
 0x2b9   : > { %v1128_v54 = vadd.f32 %v1127_v52, %v3092_v0  ;;  %v1129_v55 = vpop.f32.mrb[49].mxu0  ;;  %2094 = vmatprep.subr.bf16.mxu1 %v2083_v43 }
 0x2ba   : > { %v1130_v56 = vadd.f32 %v1129_v55, %v3095_v1  ;;  %1388 = vmatprep.mubr.f32.mxu1 %v1189_v51 }
 0x2bb   : > { %1389 = vmatmul.mubr.f32.gmra.mrb[46].mxu1 %v1188_v53  ;;  %v1190_v58 = vmax.f32 %v1128_v54, 0.0 }
 0x2bc   : > { %v1191_v7 = vmax.f32 %v1130_v56, 0.0  ;;  %v1133_v57 = vpop.f32.mrb[50].mxu0 }
 0x2bd   : > { %v1134_v59 = vadd.f32 %v1133_v57, %v3092_v0  ;;  %v1135_v60 = vpop.f32.mrb[51].mxu0 }
 0x2be   : > { %v1136_v61 = vadd.f32 %v1135_v60, %v3095_v1  ;;  %1394 = vmatprep.mubr.f32.mxu1 %v1191_v7 }
 0x2bf   : > { %1395 = vmatmul.mubr.f32.gmra.mrb[48].mxu1 %v1190_v58  ;;  %v1192_v2 = vmax.f32 %v1134_v59, 0.0 }
 0x2c0   : > { %v1193_v63 = vmax.f32 %v1136_v61, 0.0  ;;  %v1139_v62 = vpop.f32.mrb[52].mxu0 }
 0x2c1   : > { %v1140_v3 = vadd.f32 %v1139_v62, %v3092_v0  ;;  %v1141_v4 = vpop.f32.mrb[53].mxu0 }
 0x2c2   : > { %v1142_v29 = vadd.f32 %v1141_v4, %v3095_v1  ;;  %1400 = vmatprep.mubr.f32.mxu1 %v1193_v63 }
 0x2c3   : > { %1401 = vmatmul.mubr.f32.gmra.mrb[50].mxu1 %v1192_v2  ;;  %v1194_v6 = vmax.f32 %v1140_v3, 0.0 }
 0x2c4   : > { %v1195_v30 = vmax.f32 %v1142_v29, 0.0  ;;  %v1145_v5 = vpop.f32.mrb[54].mxu0 }
 0x2c5   : > { %v1146_v8 = vadd.f32 %v1145_v5, %v3092_v0  ;;  %v1147_v9 = vpop.f32.mrb[55].mxu0 }
 0x2c6   : > { %v1148_v10 = vadd.f32 %v1147_v9, %v3095_v1  ;;  %1406 = vmatprep.mubr.f32.mxu1 %v1195_v30 }
 0x2c7   : > { %1407 = vmatmul.mubr.f32.gmra.mrb[52].mxu1 %v1194_v6  ;;  %v1196_v13 = vmax.f32 %v1146_v8, 0.0 }
 0x2c8   : > { %v1197_v11 = vmax.f32 %v1148_v10, 0.0  ;;  %v1151_v12 = vpop.f32.mrb[56].mxu0 }
 0x2c9   : > { %v1152_v14 = vadd.f32 %v1151_v12, %v3092_v0  ;;  %v1153_v40 = vpop.f32.mrb[57].mxu0 }
 0x2ca   : > { %v1154_v41 = vadd.f32 %v1153_v40, %v3095_v1  ;;  %1412 = vmatprep.mubr.f32.mxu1 %v1197_v11 }
 0x2cb   : > { %1413 = vmatmul.mubr.f32.gmra.mrb[54].mxu1 %v1196_v13  ;;  %v1198_v17 = vmax.f32 %v1152_v14, 0.0 }
 0x2cc   : > { %v1199_v15 = vmax.f32 %v1154_v41, 0.0  ;;  %v1157_v16 = vpop.f32.mrb[58].mxu0 }
 0x2cd   : > { %v1158_v18 = vadd.f32 %v1157_v16, %v3092_v0  ;;  %v1159_v19 = vpop.f32.mrb[59].mxu0 }
 0x2ce   : > { %v1160_v20 = vadd.f32 %v1159_v19, %v3095_v1  ;;  %1418 = vmatprep.mubr.f32.mxu1 %v1199_v15 }
 0x2cf   : > { %1419 = vmatmul.mubr.f32.gmra.mrb[56].mxu1 %v1198_v17  ;;  %v1200_v23 = vmax.f32 %v1158_v18, 0.0 }
 0x2d0   : > { %v1201_v21 = vmax.f32 %v1160_v20, 0.0  ;;  %v1163_v22 = vpop.f32.mrb[60].mxu0 }
 0x2d1   : > { %v1164_v24 = vadd.f32 %v1163_v22, %v3092_v0  ;;  %v1165_v26 = vpop.f32.mrb[61].mxu0 }
 0x2d2   : > { %v1166_v28 = vadd.f32 %v1165_v26, %v3095_v1  ;;  %1424 = vmatprep.mubr.f32.mxu1 %v1201_v21 }
 0x2d3   : > { %1425 = vmatmul.mubr.f32.gmra.mrb[58].mxu1 %v1200_v23  ;;  %v1202_v33 = vmax.f32 %v1164_v24, 0.0 }
 0x2d4   : > { %v1203_v31 = vmax.f32 %v1166_v28, 0.0  ;;  %v1169_v32 = vpop.f32.mrb[62].mxu0 }
 0x2d5   : > { %v1170_v34 = vadd.f32 %v1169_v32, %v3092_v0  ;;  %v1171_v35 = vpop.f32.mrb[63].mxu0  ;;  %v1489_v0 = vld [vmem:[%s3251_s9 + $0x70] sm:$0xff] }
 0x2d6   : > { %v1172_v36 = vadd.f32 %v1171_v35, %v3095_v1  ;;  %1430 = vmatprep.mubr.f32.mxu1 %v1203_v31  ;;  %v1490_v1 = vld [vmem:[%s3251_s9 + $0x78] sm:$0xff] }
 0x2d7   : > { %1431 = vmatmul.mubr.f32.gmra.mrb[60].mxu1 %v1202_v33  ;;  %v1204_v38 = vmax.f32 %v1170_v34, 0.0  ;;  %v2085_v44 = vpack.c.bf16 %v1490_v1, %v1489_v0 }
 0x2d8   : > { %v1205_v37 = vmax.f32 %v1172_v36, 0.0 }
 0x2d9   : > { %2086 = vmatpush3.bf16.msra.mxu0 %v2085_v44  ;;  %2102 = vmatpush3.bf16.msra.mxu1 %v2085_v44 }
 0x2da   : > { %1436 = vmatprep.mubr.f32.mxu1 %v1205_v37 }
 0x2db   : > { %1437 = vmatmul.mubr.f32.gmra.mrb[62].mxu1 %v1204_v38 }
 0x372   : > { %v1348_v48 = vpop.f32.mrb[32].mxu1 }
 0x373   : > { %v1349_v49 = vadd.f32 %v1348_v48, %v3158_v46  ;;  %v1350_v50 = vpop.f32.mrb[33].mxu1 }
 0x374   : > { %v1351_v51 = vadd.f32 %v1350_v50, %v3161_v47 }
 0x375   : > { %v1443_v54 = vmax.f32 %v1349_v49, 0.0 }
 0x376   : > { %v1444_v52 = vmax.f32 %v1351_v51, 0.0  ;;  %v1354_v53 = vpop.f32.mrb[34].mxu1 }
 0x377   : > { %v1355_v55 = vadd.f32 %v1354_v53, %v3158_v46  ;;  %v1356_v56 = vpop.f32.mrb[35].mxu1 }
 0x378   : > { %v1357_v7 = vadd.f32 %v1356_v56, %v3161_v47  ;;  %1578 = vmatprep.mubr.f32.mxu0 %v1444_v52 }
 0x379   : > { %1579 = vmatmul.mubr.f32.vlgmr.msra.gmra.mrb[64].mxu0 %v1443_v54  ;;  %v1445_v27 = vmax.f32 %v1355_v55, 0.0 }
 0x37a   : > { %v1446_v25 = vmax.f32 %v1357_v7, 0.0  ;;  %v1360_v57 = vpop.f32.mrb[36].mxu1 }
 0x37b   : > { %v1361_v58 = vadd.f32 %v1360_v57, %v3158_v46  ;;  %v1362_v59 = vpop.f32.mrb[37].mxu1 }
 0x37c   : > { %v1363_v60 = vadd.f32 %v1362_v59, %v3161_v47  ;;  %1583 = vmatprep.mubr.f32.mxu0 %v1446_v25 }
 0x37d   : > { %1584 = vmatmul.mubr.f32.gmra.mrb[66].mxu0 %v1445_v27  ;;  %v1447_v62 = vmax.f32 %v1361_v58, 0.0 }
 0x37e   : > { %v1448_v61 = vmax.f32 %v1363_v60, 0.0  ;;  %v1366_v63 = vpop.f32.mrb[38].mxu1 }
 0x37f   : > { %v1367_v2 = vadd.f32 %v1366_v63, %v3158_v46  ;;  %v1368_v3 = vpop.f32.mrb[39].mxu1 }
 0x380   : > { %v1369_v4 = vadd.f32 %v1368_v3, %v3161_v47  ;;  %1588 = vmatprep.mubr.f32.mxu0 %v1448_v61 }
 0x381   : > { %1589 = vmatmul.mubr.f32.gmra.mrb[68].mxu0 %v1447_v62  ;;  %v1449_v5 = vmax.f32 %v1367_v2, 0.0 }
 0x382   : > { %v1450_v29 = vmax.f32 %v1369_v4, 0.0  ;;  %v1372_v30 = vpop.f32.mrb[40].mxu1 }
 0x383   : > { %v1373_v6 = vadd.f32 %v1372_v30, %v3158_v46  ;;  %v1374_v8 = vpop.f32.mrb[41].mxu1 }
 0x384   : > { %v1375_v9 = vadd.f32 %v1374_v8, %v3161_v47  ;;  %1593 = vmatprep.mubr.f32.mxu0 %v1450_v29 }
 0x385   : > { %1594 = vmatmul.mubr.f32.gmra.mrb[70].mxu0 %v1449_v5  ;;  %v1451_v12 = vmax.f32 %v1373_v6, 0.0 }
 0x386   : > { %v1452_v10 = vmax.f32 %v1375_v9, 0.0  ;;  %v1378_v11 = vpop.f32.mrb[42].mxu1 }
 0x387   : > { %v1379_v13 = vadd.f32 %v1378_v11, %v3158_v46  ;;  %v1380_v14 = vpop.f32.mrb[43].mxu1 }
 0x388   : > { %v1381_v40 = vadd.f32 %v1380_v14, %v3161_v47  ;;  %1598 = vmatprep.mubr.f32.mxu0 %v1452_v10 }
 0x389   : > { %1599 = vmatmul.mubr.f32.gmra.mrb[72].mxu0 %v1451_v12  ;;  %v1453_v16 = vmax.f32 %v1379_v13, 0.0 }
 0x38a   : > { %v1454_v41 = vmax.f32 %v1381_v40, 0.0  ;;  %v1384_v15 = vpop.f32.mrb[44].mxu1 }
 0x38b   : > { %v1385_v17 = vadd.f32 %v1384_v15, %v3158_v46  ;;  %v1386_v18 = vpop.f32.mrb[45].mxu1  ;;  %v3198_v15 = vld [vmem:[%s3252_s10] ss:$0 sm:$0xff] }
 0x38c   : > { %v1387_v19 = vadd.f32 %v1386_v18, %v3161_v47  ;;  %1603 = vmatprep.mubr.f32.mxu0 %v1454_v41 }
 0x38d   : > { %1604 = vmatmul.mubr.f32.gmra.mrb[74].mxu0 %v1453_v16  ;;  %v1455_v22 = vmax.f32 %v1385_v17, 0.0 }
 0x38e   : > { %v1456_v20 = vmax.f32 %v1387_v19, 0.0  ;;  %v1390_v21 = vpop.f32.mrb[46].mxu1 }
 0x38f   : > { %v1391_v23 = vadd.f32 %v1390_v21, %v3158_v46  ;;  %v1392_v24 = vpop.f32.mrb[47].mxu1 }
 0x390   : > { %v1393_v26 = vadd.f32 %v1392_v24, %v3161_v47  ;;  %1608 = vmatprep.mubr.f32.mxu0 %v1456_v20 }
 0x391   : > { %1609 = vmatmul.mubr.f32.gmra.mrb[76].mxu0 %v1455_v22  ;;  %v1457_v32 = vmax.f32 %v1391_v23, 0.0 }
 0x392   : > { %v1458_v28 = vmax.f32 %v1393_v26, 0.0  ;;  %v1396_v31 = vpop.f32.mrb[48].mxu1 }
 0x393   : > { %v1397_v33 = vadd.f32 %v1396_v31, %v3158_v46  ;;  %v1398_v34 = vpop.f32.mrb[49].mxu1 }
 0x394   : > { %v1399_v35 = vadd.f32 %v1398_v34, %v3161_v47  ;;  %1613 = vmatprep.mubr.f32.mxu0 %v1458_v28 }
 0x395   : > { %1614 = vmatmul.mubr.f32.gmra.mrb[78].mxu0 %v1457_v32  ;;  %v1459_v38 = vmax.f32 %v1397_v33, 0.0 }
 0x396   : > { %v1460_v36 = vmax.f32 %v1399_v35, 0.0  ;;  %v1402_v37 = vpop.f32.mrb[50].mxu1 }
 0x397   : > { %v1403_v39 = vadd.f32 %v1402_v37, %v3158_v46  ;;  %v1404_v42 = vpop.f32.mrb[51].mxu1 }
 0x398   : > { %v1405_v43 = vadd.f32 %v1404_v42, %v3161_v47  ;;  %1618 = vmatprep.mubr.f32.mxu0 %v1460_v36 }
 0x399   : > { %1619 = vmatmul.mubr.f32.gmra.mrb[80].mxu0 %v1459_v38  ;;  %v1461_v44 = vmax.f32 %v1403_v39, 0.0 }
 0x39a   : > { %v1462_v0 = vmax.f32 %v1405_v43, 0.0  ;;  %v1408_v1 = vpop.f32.mrb[52].mxu1 }
 0x39b   : > { %v1409_v45 = vadd.f32 %v1408_v1, %v3158_v46  ;;  %v1410_v48 = vpop.f32.mrb[53].mxu1 }
 0x39c   : > { %v1411_v49 = vadd.f32 %v1410_v48, %v3161_v47  ;;  %1623 = vmatprep.mubr.f32.mxu0 %v1462_v0 }
 0x39d   : > { %1624 = vmatmul.mubr.f32.gmra.mrb[82].mxu0 %v1461_v44  ;;  %v1463_v52 = vmax.f32 %v1409_v45, 0.0 }
 0x39e   : > { %v1464_v50 = vmax.f32 %v1411_v49, 0.0  ;;  %v1414_v51 = vpop.f32.mrb[54].mxu1 }
 0x39f   : > { %v1415_v53 = vadd.f32 %v1414_v51, %v3158_v46  ;;  %v1416_v54 = vpop.f32.mrb[55].mxu1 }
 0x3a0   : > { %v1417_v55 = vadd.f32 %v1416_v54, %v3161_v47  ;;  %1628 = vmatprep.mubr.f32.mxu0 %v1464_v50 }
 0x3a1   : > { %1629 = vmatmul.mubr.f32.gmra.mrb[84].mxu0 %v1463_v52  ;;  %v1465_v25 = vmax.f32 %v1415_v53, 0.0 }
 0x3a2   : > { %v1466_v56 = vmax.f32 %v1417_v55, 0.0  ;;  %v1420_v7 = vpop.f32.mrb[56].mxu1 }
 0x3a3   : > { %v1421_v57 = vadd.f32 %v1420_v7, %v3158_v46  ;;  %v1422_v27 = vpop.f32.mrb[57].mxu1 }
 0x3a4   : > { %v1423_v58 = vadd.f32 %v1422_v27, %v3161_v47  ;;  %1633 = vmatprep.mubr.f32.mxu0 %v1466_v56 }
 0x3a5   : > { %1634 = vmatmul.mubr.f32.gmra.mrb[86].mxu0 %v1465_v25  ;;  %v1467_v61 = vmax.f32 %v1421_v57, 0.0 }
 0x3a6   : > { %v1468_v59 = vmax.f32 %v1423_v58, 0.0  ;;  %v1426_v60 = vpop.f32.mrb[58].mxu1 }
 0x3a7   : > { %v1427_v63 = vadd.f32 %v1426_v60, %v3158_v46  ;;  %v1428_v62 = vpop.f32.mrb[59].mxu1 }
 0x3a8   : > { %v1429_v2 = vadd.f32 %v1428_v62, %v3161_v47  ;;  %1638 = vmatprep.mubr.f32.mxu0 %v1468_v59 }
 0x3a9   : > { %1639 = vmatmul.mubr.f32.gmra.mrb[88].mxu0 %v1467_v61  ;;  %v1469_v29 = vmax.f32 %v1427_v63, 0.0 }
 0x3aa   : > { %v1470_v3 = vmax.f32 %v1429_v2, 0.0  ;;  %v1432_v4 = vpop.f32.mrb[60].mxu1 }
 0x3ab   : > { %v1433_v30 = vadd.f32 %v1432_v4, %v3158_v46  ;;  %v1434_v5 = vpop.f32.mrb[61].mxu1 }
 0x3ac   : > { %v1435_v6 = vadd.f32 %v1434_v5, %v3161_v47  ;;  %1643 = vmatprep.mubr.f32.mxu0 %v1470_v3 }
 0x3ad   : > { %1644 = vmatmul.mubr.f32.gmra.mrb[90].mxu0 %v1469_v29  ;;  %v1471_v10 = vmax.f32 %v1433_v30, 0.0 }
 0x3ae   : > { %v1472_v8 = vmax.f32 %v1435_v6, 0.0  ;;  %v1438_v9 = vpop.f32.mrb[62].mxu1 }
 0x3af   : > { %v1439_v11 = vadd.f32 %v1438_v9, %v3158_v46  ;;  %v1440_v12 = vpop.f32.mrb[63].mxu1 }
 0x3b0   : > { %v1441_v13 = vadd.f32 %v1440_v12, %v3161_v47  ;;  %1648 = vmatprep.mubr.f32.mxu0 %v1472_v8 }
 0x3b1   : > { %1649 = vmatmul.mubr.f32.gmra.mrb[92].mxu0 %v1471_v10  ;;  %v1473_v40 = vmax.f32 %v1439_v11, 0.0 }
 0x3b2   : > { %v1474_v14 = vmax.f32 %v1441_v13, 0.0 }
 0x3b4   : > { %1653 = vmatprep.mubr.f32.mxu1 %v1474_v14 }
 0x3b5   : > { %1654 = vmatmul.mubr.f32.vlgmr.msra.gmra.mrb[64].mxu1 %v1473_v40 }
 0x44c   : > { %v1807_v41 = vpop.f32.mrb[64].mxu0 }
 0x44d   : > { %v1808_v16 = vpop.f32.mrb[65].mxu0 }
 0x44e   : > { %v1809_v17 = vadd.f32 %v1808_v16, %v1807_v41 }
 0x450   : > { %v1581_v46 = vadd.f32 %v1809_v17, %v3198_v15  ;;  %v1810_v18 = vpop.f32.mrb[66].mxu0 }
 0x451   : > { %v1811_v19 = vpop.f32.mrb[67].mxu0 }
 0x452   : > { %2112 = vtanh.f32 %v1581_v46  ;;  %v1812_v47 = vadd.f32 %v1811_v19, %v1810_v18 }
 0x454   : > { %v1586_v20 = vadd.f32 %v1812_v47, %v3198_v15  ;;  %v1813_v21 = vpop.f32.mrb[68].mxu0 }
 0x455   : > { %v1814_v22 = vpop.f32.mrb[69].mxu0 }
 0x456   : > { %2114 = vtanh.f32 %v1586_v20  ;;  %v1815_v23 = vadd.f32 %v1814_v22, %v1813_v21 }
 0x458   : > { %v1591_v24 = vadd.f32 %v1815_v23, %v3198_v15  ;;  %v1816_v26 = vpop.f32.mrb[70].mxu0 }
 0x459   : > { %v1817_v28 = vpop.f32.mrb[71].mxu0 }
 0x45a   : > { %2116 = vtanh.f32 %v1591_v24  ;;  %v1818_v31 = vadd.f32 %v1817_v28, %v1816_v26 }
 0x45c   : > { %v2113_v32 = vpop.eup %2112  ;;  %v1596_v33 = vadd.f32 %v1818_v31, %v3198_v15  ;;  %v1819_v34 = vpop.f32.mrb[72].mxu0 }
 0x45d   : > { %1675 = vst [vmem:[%s3208_s24] sm:$0xff] %v2113_v32  ;;  %v1820_v35 = vpop.f32.mrb[73].mxu0 }
 0x45e   : > { %2118 = vtanh.f32 %v1596_v33  ;;  %v1821_v36 = vadd.f32 %v1820_v35, %v1819_v34 }
 0x460   : > { %v2115_v37 = vpop.eup %2114  ;;  %v1601_v38 = vadd.f32 %v1821_v36, %v3198_v15  ;;  %v1822_v39 = vpop.f32.mrb[74].mxu0 }
 0x461   : > { %1676 = vst [vmem:[%s3208_s24 + $0x8] sm:$0xff] %v2115_v37  ;;  %v1823_v42 = vpop.f32.mrb[75].mxu0 }
 0x462   : > { %2120 = vtanh.f32 %v1601_v38  ;;  %v1824_v43 = vadd.f32 %v1823_v42, %v1822_v39 }
 0x464   : > { %v2117_v0 = vpop.eup %2116  ;;  %v1606_v1 = vadd.f32 %v1824_v43, %v3198_v15  ;;  %v1825_v44 = vpop.f32.mrb[76].mxu0 }
 0x465   : > { %1677 = vst [vmem:[%s3208_s24 + $0x10] sm:$0xff] %v2117_v0  ;;  %v1826_v45 = vpop.f32.mrb[77].mxu0 }
 0x466   : > { %2122 = vtanh.f32 %v1606_v1  ;;  %v1827_v48 = vadd.f32 %v1826_v45, %v1825_v44 }
 0x468   : > { %v2119_v49 = vpop.eup %2118  ;;  %v1611_v50 = vadd.f32 %v1827_v48, %v3198_v15  ;;  %v1828_v51 = vpop.f32.mrb[78].mxu0 }
 0x469   : > { %1678 = vst [vmem:[%s3208_s24 + $0x18] sm:$0xff] %v2119_v49  ;;  %v1829_v52 = vpop.f32.mrb[79].mxu0 }
 0x46a   : > { %2124 = vtanh.f32 %v1611_v50  ;;  %v1830_v53 = vadd.f32 %v1829_v52, %v1828_v51 }
 0x46c   : > { %v2121_v54 = vpop.eup %2120  ;;  %v1616_v55 = vadd.f32 %v1830_v53, %v3198_v15  ;;  %v1831_v56 = vpop.f32.mrb[80].mxu0 }
 0x46d   : > { %1679 = vst [vmem:[%s3208_s24 + $0x20] sm:$0xff] %v2121_v54  ;;  %v1832_v7 = vpop.f32.mrb[81].mxu0 }
 0x46e   : > { %2126 = vtanh.f32 %v1616_v55  ;;  %v1833_v25 = vadd.f32 %v1832_v7, %v1831_v56 }
 0x470   : > { %v2123_v57 = vpop.eup %2122  ;;  %v1621_v27 = vadd.f32 %v1833_v25, %v3198_v15  ;;  %v1834_v58 = vpop.f32.mrb[82].mxu0 }
 0x471   : > { %1680 = vst [vmem:[%s3208_s24 + $0x28] sm:$0xff] %v2123_v57  ;;  %v1835_v59 = vpop.f32.mrb[83].mxu0 }
 0x472   : > { %2128 = vtanh.f32 %v1621_v27  ;;  %v1836_v60 = vadd.f32 %v1835_v59, %v1834_v58 }
 0x474   : > { %v2125_v61 = vpop.eup %2124  ;;  %v1626_v63 = vadd.f32 %v1836_v60, %v3198_v15  ;;  %v1837_v62 = vpop.f32.mrb[84].mxu0 }
 0x475   : > { %1681 = vst [vmem:[%s3208_s24 + $0x30] sm:$0xff] %v2125_v61  ;;  %v1838_v2 = vpop.f32.mrb[85].mxu0 }
 0x476   : > { %2130 = vtanh.f32 %v1626_v63  ;;  %v1839_v3 = vadd.f32 %v1838_v2, %v1837_v62 }
 0x478   : > { %v2127_v4 = vpop.eup %2126  ;;  %v1631_v29 = vadd.f32 %v1839_v3, %v3198_v15  ;;  %v1840_v30 = vpop.f32.mrb[86].mxu0 }
 0x479   : > { %1682 = vst [vmem:[%s3208_s24 + $0x38] sm:$0xff] %v2127_v4  ;;  %v1841_v5 = vpop.f32.mrb[87].mxu0 }
 0x47a   : > { %2132 = vtanh.f32 %v1631_v29  ;;  %v1842_v6 = vadd.f32 %v1841_v5, %v1840_v30 }
 0x47c   : > { %v2129_v8 = vpop.eup %2128  ;;  %v1636_v9 = vadd.f32 %v1842_v6, %v3198_v15  ;;  %v1843_v10 = vpop.f32.mrb[88].mxu0 }
 0x47d   : > { %1683 = vst [vmem:[%s3208_s24 + $0x40] sm:$0xff] %v2129_v8  ;;  %v1844_v11 = vpop.f32.mrb[89].mxu0 }
 0x47e   : > { %2134 = vtanh.f32 %v1636_v9  ;;  %v1845_v12 = vadd.f32 %v1844_v11, %v1843_v10 }
 0x480   : > { %v2131_v13 = vpop.eup %2130  ;;  %v1641_v14 = vadd.f32 %v1845_v12, %v3198_v15  ;;  %v1846_v40 = vpop.f32.mrb[90].mxu0 }
 0x481   : > { %1684 = vst [vmem:[%s3208_s24 + $0x48] sm:$0xff] %v2131_v13  ;;  %v1847_v41 = vpop.f32.mrb[91].mxu0 }
 0x482   : > { %2136 = vtanh.f32 %v1641_v14  ;;  %v1848_v16 = vadd.f32 %v1847_v41, %v1846_v40 }
 0x484   : > { %v2133_v17 = vpop.eup %2132  ;;  %v1646_v46 = vadd.f32 %v1848_v16, %v3198_v15  ;;  %v1849_v18 = vpop.f32.mrb[92].mxu0 }
 0x485   : > { %1685 = vst [vmem:[%s3208_s24 + $0x50] sm:$0xff] %v2133_v17  ;;  %v1850_v19 = vpop.f32.mrb[93].mxu0 }
 0x486   : > { %2138 = vtanh.f32 %v1646_v46  ;;  %v1851_v47 = vadd.f32 %v1850_v19, %v1849_v18 }
 0x488   : > { %v2135_v20 = vpop.eup %2134  ;;  %v1651_v21 = vadd.f32 %v1851_v47, %v3198_v15  ;;  %v1852_v22 = vpop.f32.mrb[64].mxu1 }
 0x489   : > { %1686 = vst [vmem:[%s3208_s24 + $0x58] sm:$0xff] %v2135_v20  ;;  %v1853_v23 = vpop.f32.mrb[65].mxu1 }
 0x48a   : > { %2140 = vtanh.f32 %v1651_v21  ;;  %v1854_v24 = vadd.f32 %v1853_v23, %v1852_v22 }
 0x48c   : > { %v2137_v26 = vpop.eup %2136  ;;  %v1656_v28 = vadd.f32 %v1854_v24, %v3198_v15 }
 0x48d   : > { %1687 = vst [vmem:[%s3208_s24 + $0x60] sm:$0xff] %v2137_v26 }
 0x48e   : > { %2142 = vtanh.f32 %v1656_v28 }
 0x490   : > { %v2139_v31 = vpop.eup %2138 }
 0x491   : > { %1688 = vst [vmem:[%s3208_s24 + $0x68] sm:$0xff] %v2139_v31 }
 0x494   : > { %v2141_v32 = vpop.eup %2140 }
 0x495   : > { %1689 = vst [vmem:[%s3208_s24 + $0x70] sm:$0xff] %v2141_v32 }
 0x498   : > { %v2143_v33 = vpop.eup %2142 }
 0x499   : > { %1690 = vst [vmem:[%s3208_s24 + $0x78] sm:$0xff] %v2143_v33 }
 0x49a PF: > { %s21_s17 = sadd.s32 1, %s2150_s17  }
 0x49b   : > { %p18_p4 = scmp.ge.s32.totalorder %s21_s17, 4  }
 0x49d   :  { %20 = sbr.rel (!%p18_p4) target bundleno = 1 (0x1), region = 94 }

</bundles_post_ra>
